<compile_context>
chip_gen: v6e
topology: v6e:2x2x1
jax: 0.10.0
libtpu: 0.0.40
codegen_flags: <defaults>
</compile_context>

<pallas_src>
import math

import jax
import jax.numpy as jnp
from jax.experimental import pallas as pl
from jax.experimental.pallas import tpu as pltpu

# ----------------------- small, deterministic config -----------------------
B = 2            # batch
T = 8            # sequence length
D = 32           # config.bert_hid_size
NH = 2           # attention heads
DH = D // NH     # head dim
INTER = 64       # BERT FFN intermediate size
LAYERS = 2       # synthetic BERT encoder layers
VOCAB = 100
MAXPOS = 32
LABELS = 5       # config.label_num
CLS_PAD = 128    # lane-dense padded width of the label head
N = B * T        # flattened row count


# ------------------------------ kernel helpers ------------------------------
def _layernorm(x, g, b, eps=1e-12):
    mean = jnp.mean(x, axis=-1, keepdims=True)
    var = jnp.mean(jnp.square(x - mean), axis=-1, keepdims=True)
    return (x - mean) * jax.lax.rsqrt(var + eps) * g + b


def _gelu(x):  # exact (erf) GELU, as in BERT
    return 0.5 * x * (1.0 + jax.lax.erf(x / jnp.sqrt(jnp.float32(2.0))))


# ------------------------- fused encoder+head kernel -------------------------
def _encoder_kernel(x_ref, keyok_ref, bidc_ref, bidr_ref, eg_ref, eb_ref,
                    wqkv_ref, bqkv_ref, wo_ref, bo_ref, g1_ref, b1_ref,
                    wi_ref, bi_ref, wf_ref, bf_ref, g2_ref, b2_ref,
                    cw_ref, cb_ref, out_ref):
    """Single invocation: embedding LN -> LAYERS transformer layers -> head.

    Hidden state is carried in registers across the static layer loop; weights
    are stacked (LAYERS, ...) VMEM refs indexed by the static layer index.
    """
    # ---- additive attention mask built in-kernel (no O(N^2) HBM traffic) ----
    # allow[i, j] = (batch_id[i] == batch_id[j]) and key j is a real token.
    bid_q = jnp.broadcast_to(bidc_ref[...], (N, N))           # (N, N)
    bid_k = jnp.broadcast_to(bidr_ref[...], (N, N))           # (N, N)
    keyok = jnp.broadcast_to(keyok_ref[...], (N, N))          # (N, N)
    allow = jnp.where(bid_q == bid_k, keyok, 0.0)
    mask2d = (allow - 1.0) * 10000.0                          # 0 / -10000

    # ------------------------ embedding LayerNorm -------------------------
    x = _layernorm(x_ref[...], eg_ref[...], eb_ref[...])      # (N, D) f32

    for l in range(LAYERS):                                   # static unroll
        # ---------------- fused multi-head self-attention ----------------
        # Fused QKV projection; 1/sqrt(DH) already folded into the Q columns.
        qkv = jnp.dot(x.astype(jnp.bfloat16), wqkv_ref[l],
                      preferred_element_type=jnp.float32) + bqkv_ref[l]  # (N, 3D)

        # NOTE: DH=16 lane slices of qkv are masked vreg ops at this toy size;
        # lane utilization is bounded by D=32 anyway until the config grows.
        ctx_heads = []
        for h in range(NH):
            c0 = h * DH
            q = qkv[:, c0:c0 + DH].astype(jnp.bfloat16)
            k = qkv[:, D + c0:D + c0 + DH].astype(jnp.bfloat16)
            v = qkv[:, 2 * D + c0:2 * D + c0 + DH].astype(jnp.bfloat16)
            # contract last dims of q and k -> no transposed copy of k
            s = jax.lax.dot_general(
                q, k, dimension_numbers=(((1,), (1,)), ((), ())),
                preferred_element_type=jnp.float32) + mask2d
            s = s - jnp.max(s, axis=-1, keepdims=True)
            p = jnp.exp(s)
            p = p * pl.reciprocal(jnp.sum(p, axis=-1, keepdims=True), approx=True)
            ctx_heads.append(jnp.dot(p.astype(jnp.bfloat16), v,
                                     preferred_element_type=jnp.float32))
        # single (N, D) @ (D, D) output projection instead of NH K=16 matmuls
        ctx = jnp.concatenate(ctx_heads, axis=-1)              # (N, D) f32
        attn = jnp.dot(ctx.astype(jnp.bfloat16), wo_ref[l],
                       preferred_element_type=jnp.float32) + bo_ref[l]
        h1 = _layernorm(x + attn, g1_ref[l], b1_ref[l])

        # ----------------------------- fused FFN -----------------------------
        inter = _gelu(jnp.dot(h1.astype(jnp.bfloat16), wi_ref[l],
                              preferred_element_type=jnp.float32) + bi_ref[l])
        ffn = jnp.dot(inter.astype(jnp.bfloat16), wf_ref[l],
                      preferred_element_type=jnp.float32) + bf_ref[l]
        x = _layernorm(h1 + ffn, g2_ref[l], b2_ref[l])

    # --------- label-head epilogue (lane-dense, CLS_PAD=128 output) ---------
    # Dropout(0.5) on sequence_output is identity in eval mode.
    # TODO(synk): training-mode Bernoulli dropout mask not applied.
    out_ref[...] = (jnp.dot(x.astype(jnp.bfloat16), cw_ref[...],
                            preferred_element_type=jnp.float32)
                    + cb_ref[...]).astype(out_ref.dtype)


def encoder_forward(params, x_emb2d, keyok_row, bid_col, bid_row):
    vmem = pl.BlockSpec(memory_space=pltpu.MemorySpace.VMEM)
    return pl.pallas_call(
        _encoder_kernel,
        out_shape=jax.ShapeDtypeStruct((N, CLS_PAD), jnp.float32),
        in_specs=[vmem] * 20,
        out_specs=vmem,
        compiler_params=pltpu.CompilerParams(vmem_limit_bytes=32 * 1024 * 1024),
    )(x_emb2d, keyok_row, bid_col, bid_row,
      params["emb_ln_g"], params["emb_ln_b"],
      params["wqkv"], params["bqkv"], params["wo"], params["bo"],
      params["ln1_g"], params["ln1_b"],
      params["wi"], params["bi"], params["wf"], params["bf"],
      params["ln2_g"], params["ln2_b"],
      params["cls_w"], params["cls_b"])


# ------------------------------ model forward -------------------------------
def bert_linear_forward(params, bert_inputs):
    # attention_mask = bert_inputs.ne(0).float()  (key-padding mask)
    keyok_row = (bert_inputs != 0).astype(jnp.float32).reshape(1, N)   # (1, N)
    # batch id per flattened row; queries only attend keys of the same batch.
    bid = jnp.repeat(jnp.arange(B, dtype=jnp.float32), T)              # (N,)
    bid_col = bid.reshape(N, 1)
    bid_row = bid.reshape(1, N)

    # BERT embeddings (token + position + segment-0); gathers stay in plain JAX.
    pos = jnp.arange(T)
    x = (params["word_emb"][bert_inputs]
         + params["pos_emb"][pos][None, :, :]
         + params["type_emb"][0][None, None, :])                       # (B, T, D)

    # cls_output (BERT pooler, outputs[1]) is unused in bertLinear.forward
    # and therefore never computed.
    out_padded = encoder_forward(params, x.reshape(N, D),
                                 keyok_row, bid_col, bid_row)
    return out_padded[:, :LABELS].reshape(B, T, LABELS)


# --------------------------- deterministic init ----------------------------
def init_params(key):
    ks = iter(jax.random.split(key, 64))

    def nrm(shape, scale=0.02):
        return (scale * jax.random.normal(next(ks), shape)).astype(jnp.float32)

    zeros = lambda s: jnp.zeros(s, jnp.float32)
    ones = lambda s: jnp.ones(s, jnp.float32)

    inv_sqrt_dh = 1.0 / math.sqrt(DH)
    wqkv, bqkv, wo, bo, g1, b1 = [], [], [], [], [], []
    wi, bi, wf, bf, g2, b2 = [], [], [], [], [], []
    for _ in range(LAYERS):
        wq, wk, wv = nrm((D, D)), nrm((D, D)), nrm((D, D))
        bq_, bk_, bv_ = zeros((D,)), zeros((D,)), zeros((D,))
        # fold 1/sqrt(DH) into the query projection (weights AND bias)
        wqkv.append(jnp.concatenate([wq * inv_sqrt_dh, wk, wv], axis=1))
        bqkv.append(jnp.concatenate([bq_ * inv_sqrt_dh, bk_, bv_])[None, :])
        wo.append(nrm((D, D)));        bo.append(zeros((1, D)))
        g1.append(ones((1, D)));       b1.append(zeros((1, D)))
        wi.append(nrm((D, INTER)));    bi.append(zeros((1, INTER)))
        wf.append(nrm((INTER, D)));    bf.append(zeros((1, D)))
        g2.append(ones((1, D)));       b2.append(zeros((1, D)))

    lin_w = nrm((D, LABELS))
    lin_b = zeros((LABELS,))
    cls_w = jnp.zeros((D, CLS_PAD), jnp.float32).at[:, :LABELS].set(lin_w)
    cls_b = jnp.zeros((1, CLS_PAD), jnp.float32).at[0, :LABELS].set(lin_b)

    stack = lambda lst: jnp.stack(lst, axis=0)
    return {
        "word_emb": nrm((VOCAB, D)),
        "pos_emb": nrm((MAXPOS, D)),
        "type_emb": nrm((2, D)),
        "emb_ln_g": ones((1, D)), "emb_ln_b": zeros((1, D)),
        # per-layer stacks; MXU weights stored in bf16
        "wqkv": stack(wqkv).astype(jnp.bfloat16), "bqkv": stack(bqkv),
        "wo": stack(wo).astype(jnp.bfloat16),     "bo": stack(bo),
        "ln1_g": stack(g1), "ln1_b": stack(b1),
        "wi": stack(wi).astype(jnp.bfloat16),     "bi": stack(bi),
        "wf": stack(wf).astype(jnp.bfloat16),     "bf": stack(bf),
        "ln2_g": stack(g2), "ln2_b": stack(b2),
        # lane-dense padded classifier head
        "cls_w": cls_w.astype(jnp.bfloat16), "cls_b": cls_b,
    }


# ----------------------------------- main -----------------------------------
if __name__ == "__main__":
    key = jax.random.PRNGKey(0)
    pkey, ikey = jax.random.split(key)
    params = init_params(pkey)

    bert_inputs = jax.random.randint(ikey, (B, T), 1, VOCAB).astype(jnp.int32)
    bert_inputs = bert_inputs.at[1, -2:].set(0)   # padding -> exercises attention_mask = ne(0)

    out = jax.jit(bert_linear_forward)(params, bert_inputs)
    out = jax.block_until_ready(out)
    assert out.shape == (B, T, LABELS) and out.dtype == jnp.float32
    assert bool(jnp.all(jnp.isfinite(out)))
    print("KERNEL_OK")
</pallas_src>

<mosaic_0001>
module attributes {stable_mosaic.version = 11 : i64} {
  func.func @_encoder_kernel(%arg0: memref<16x32xf32, #tpu.memory_space<vmem>>, %arg1: memref<1x16xf32, #tpu.memory_space<vmem>>, %arg2: memref<16x1xf32, #tpu.memory_space<vmem>>, %arg3: memref<1x16xf32, #tpu.memory_space<vmem>>, %arg4: memref<1x32xf32, #tpu.memory_space<vmem>>, %arg5: memref<1x32xf32, #tpu.memory_space<vmem>>, %arg6: memref<2x32x96xbf16, #tpu.memory_space<vmem>>, %arg7: memref<2x1x96xf32, #tpu.memory_space<vmem>>, %arg8: memref<2x32x32xbf16, #tpu.memory_space<vmem>>, %arg9: memref<2x1x32xf32, #tpu.memory_space<vmem>>, %arg10: memref<2x1x32xf32, #tpu.memory_space<vmem>>, %arg11: memref<2x1x32xf32, #tpu.memory_space<vmem>>, %arg12: memref<2x32x64xbf16, #tpu.memory_space<vmem>>, %arg13: memref<2x1x64xf32, #tpu.memory_space<vmem>>, %arg14: memref<2x64x32xbf16, #tpu.memory_space<vmem>>, %arg15: memref<2x1x32xf32, #tpu.memory_space<vmem>>, %arg16: memref<2x1x32xf32, #tpu.memory_space<vmem>>, %arg17: memref<2x1x32xf32, #tpu.memory_space<vmem>>, %arg18: memref<32x128xbf16, #tpu.memory_space<vmem>>, %arg19: memref<1x128xf32, #tpu.memory_space<vmem>>, %arg20: memref<16x128xf32, #tpu.memory_space<vmem>>) attributes {dimension_semantics = [], scalar_prefetch = 0 : i64, scratch_operands = 0 : i64, tpu.core_type = #tpu.core_type<tc>} {
    %c0 = arith.constant 0 : index
    %c0_0 = arith.constant 0 : index
    %0 = vector.load %arg2[%c0, %c0_0] : memref<16x1xf32, #tpu.memory_space<vmem>>, vector<16x1xf32>
    %1 = vector.shape_cast %0 : vector<16x1xf32> to vector<16x1xf32>
    %2 = vector.broadcast %1 : vector<16x1xf32> to vector<16x16xf32>
    %c0_1 = arith.constant 0 : index
    %c0_2 = arith.constant 0 : index
    %3 = vector.load %arg3[%c0_1, %c0_2] : memref<1x16xf32, #tpu.memory_space<vmem>>, vector<1x16xf32>
    %4 = vector.shape_cast %3 : vector<1x16xf32> to vector<1x16xf32>
    %5 = vector.broadcast %4 : vector<1x16xf32> to vector<16x16xf32>
    %c0_3 = arith.constant 0 : index
    %c0_4 = arith.constant 0 : index
    %6 = vector.load %arg1[%c0_3, %c0_4] : memref<1x16xf32, #tpu.memory_space<vmem>>, vector<1x16xf32>
    %7 = vector.shape_cast %6 : vector<1x16xf32> to vector<1x16xf32>
    %8 = vector.broadcast %7 : vector<1x16xf32> to vector<16x16xf32>
    %9 = arith.cmpf oeq, %2, %5 : vector<16x16xf32>
    %cst = arith.constant 0.000000e+00 : f32
    %10 = vector.broadcast %cst : f32 to vector<16x16xf32>
    %11 = arith.select %9, %8, %10 : vector<16x16xi1>, vector<16x16xf32>
    %cst_5 = arith.constant 1.000000e+00 : f32
    %12 = vector.broadcast %cst_5 : f32 to vector<16x16xf32>
    %13 = arith.subf %11, %12 : vector<16x16xf32>
    %cst_6 = arith.constant 1.000000e+04 : f32
    %14 = vector.broadcast %cst_6 : f32 to vector<16x16xf32>
    %15 = arith.mulf %13, %14 : vector<16x16xf32>
    %c0_7 = arith.constant 0 : index
    %c0_8 = arith.constant 0 : index
    %16 = vector.load %arg0[%c0_7, %c0_8] : memref<16x32xf32, #tpu.memory_space<vmem>>, vector<16x32xf32>
    %c0_9 = arith.constant 0 : index
    %c0_10 = arith.constant 0 : index
    %17 = vector.load %arg4[%c0_9, %c0_10] : memref<1x32xf32, #tpu.memory_space<vmem>>, vector<1x32xf32>
    %c0_11 = arith.constant 0 : index
    %c0_12 = arith.constant 0 : index
    %18 = vector.load %arg5[%c0_11, %c0_12] : memref<1x32xf32, #tpu.memory_space<vmem>>, vector<1x32xf32>
    %cst_13 = arith.constant dense<0.000000e+00> : vector<16xf32>
    %19 = vector.multi_reduction <add>, %16, %cst_13 [1] : vector<16x32xf32> to vector<16xf32>
    %20 = vector.shape_cast %19 : vector<16xf32> to vector<16x1xf32>
    %cst_14 = arith.constant 3.200000e+01 : f32
    %21 = vector.broadcast %cst_14 : f32 to vector<16x1xf32>
    %22 = arith.divf %20, %21 : vector<16x1xf32>
    %23 = vector.broadcast %22 : vector<16x1xf32> to vector<16x32xf32>
    %24 = arith.subf %16, %23 : vector<16x32xf32>
    %25 = arith.mulf %24, %24 : vector<16x32xf32>
    %cst_15 = arith.constant dense<0.000000e+00> : vector<16xf32>
    %26 = vector.multi_reduction <add>, %25, %cst_15 [1] : vector<16x32xf32> to vector<16xf32>
    %27 = vector.shape_cast %26 : vector<16xf32> to vector<16x1xf32>
    %cst_16 = arith.constant 3.200000e+01 : f32
    %28 = vector.broadcast %cst_16 : f32 to vector<16x1xf32>
    %29 = arith.divf %27, %28 : vector<16x1xf32>
    %30 = vector.broadcast %22 : vector<16x1xf32> to vector<16x32xf32>
    %31 = arith.subf %16, %30 : vector<16x32xf32>
    %cst_17 = arith.constant 9.99999996E-13 : f32
    %32 = vector.broadcast %cst_17 : f32 to vector<16x1xf32>
    %33 = arith.addf %29, %32 : vector<16x1xf32>
    %34 = math.rsqrt %33 : vector<16x1xf32>
    %35 = vector.broadcast %34 : vector<16x1xf32> to vector<16x32xf32>
    %36 = arith.mulf %31, %35 : vector<16x32xf32>
    %37 = vector.broadcast %17 : vector<1x32xf32> to vector<16x32xf32>
    %38 = arith.mulf %36, %37 : vector<16x32xf32>
    %39 = vector.broadcast %18 : vector<1x32xf32> to vector<16x32xf32>
    %40 = arith.addf %38, %39 : vector<16x32xf32>
    %41 = arith.truncf %40 : vector<16x32xf32> to vector<16x32xbf16>
    %c0_18 = arith.constant 0 : index
    %c0_19 = arith.constant 0 : index
    %c0_20 = arith.constant 0 : index
    %42 = vector.load %arg6[%c0_18, %c0_19, %c0_20] : memref<2x32x96xbf16, #tpu.memory_space<vmem>>, vector<1x32x96xbf16>
    %43 = vector.shape_cast %42 : vector<1x32x96xbf16> to vector<32x96xbf16>
    %cst_21 = arith.constant dense<0.000000e+00> : vector<16x96xf32>
    %44 = tpu.matmul %41, %43, %cst_21 {dimension_numbers = #tpu.dot_dimension_numbers<[1], [0], [0], [1], [0, 0, 1, 1], [], []>} : vector<16x32xbf16>, vector<32x96xbf16>, vector<16x96xf32> -> vector<16x96xf32>
    %c0_22 = arith.constant 0 : index
    %c0_23 = arith.constant 0 : index
    %c0_24 = arith.constant 0 : index
    %45 = vector.load %arg7[%c0_22, %c0_23, %c0_24] : memref<2x1x96xf32, #tpu.memory_space<vmem>>, vector<1x1x96xf32>
    %46 = vector.shape_cast %45 : vector<1x1x96xf32> to vector<1x96xf32>
    %47 = vector.broadcast %46 : vector<1x96xf32> to vector<16x96xf32>
    %48 = arith.addf %44, %47 : vector<16x96xf32>
    %49 = vector.extract_strided_slice %48 {offsets = [0, 0], sizes = [16, 16], strides = [1, 1]} : vector<16x96xf32> to vector<16x16xf32>
    %50 = arith.truncf %49 : vector<16x16xf32> to vector<16x16xbf16>
    %51 = vector.extract_strided_slice %48 {offsets = [0, 32], sizes = [16, 16], strides = [1, 1]} : vector<16x96xf32> to vector<16x16xf32>
    %52 = arith.truncf %51 : vector<16x16xf32> to vector<16x16xbf16>
    %53 = vector.extract_strided_slice %48 {offsets = [0, 64], sizes = [16, 16], strides = [1, 1]} : vector<16x96xf32> to vector<16x16xf32>
    %54 = arith.truncf %53 : vector<16x16xf32> to vector<16x16xbf16>
    %cst_25 = arith.constant dense<0.000000e+00> : vector<16x16xf32>
    %55 = tpu.matmul %50, %52, %cst_25 {dimension_numbers = #tpu.dot_dimension_numbers<[1], [1], [0], [0], [0, 0, 1, 0], [], []>} : vector<16x16xbf16>, vector<16x16xbf16>, vector<16x16xf32> -> vector<16x16xf32>
    %56 = arith.addf %55, %15 : vector<16x16xf32>
    %cst_26 = arith.constant dense<0xFF800000> : vector<16xf32>
    %57 = vector.multi_reduction <maximumf>, %56, %cst_26 [1] : vector<16x16xf32> to vector<16xf32>
    %58 = vector.shape_cast %57 : vector<16xf32> to vector<16x1xf32>
    %59 = vector.broadcast %58 : vector<16x1xf32> to vector<16x16xf32>
    %60 = arith.subf %56, %59 : vector<16x16xf32>
    %61 = math.exp %60 : vector<16x16xf32>
    %cst_27 = arith.constant dense<0.000000e+00> : vector<16xf32>
    %62 = vector.multi_reduction <add>, %61, %cst_27 [1] : vector<16x16xf32> to vector<16xf32>
    %63 = vector.shape_cast %62 : vector<16xf32> to vector<16x1xf32>
    %64 = tpu.reciprocal %63 {approx = true} : vector<16x1xf32> -> vector<16x1xf32>
    %65 = vector.broadcast %64 : vector<16x1xf32> to vector<16x16xf32>
    %66 = arith.mulf %61, %65 : vector<16x16xf32>
    %67 = arith.truncf %66 : vector<16x16xf32> to vector<16x16xbf16>
    %cst_28 = arith.constant dense<0.000000e+00> : vector<16x16xf32>
    %68 = tpu.matmul %67, %54, %cst_28 {dimension_numbers = #tpu.dot_dimension_numbers<[1], [0], [0], [1], [0, 0, 1, 1], [], []>} : vector<16x16xbf16>, vector<16x16xbf16>, vector<16x16xf32> -> vector<16x16xf32>
    %69 = vector.extract_strided_slice %48 {offsets = [0, 16], sizes = [16, 16], strides = [1, 1]} : vector<16x96xf32> to vector<16x16xf32>
    %70 = arith.truncf %69 : vector<16x16xf32> to vector<16x16xbf16>
    %71 = vector.extract_strided_slice %48 {offsets = [0, 48], sizes = [16, 16], strides = [1, 1]} : vector<16x96xf32> to vector<16x16xf32>
    %72 = arith.truncf %71 : vector<16x16xf32> to vector<16x16xbf16>
    %73 = vector.extract_strided_slice %48 {offsets = [0, 80], sizes = [16, 16], strides = [1, 1]} : vector<16x96xf32> to vector<16x16xf32>
    %74 = arith.truncf %73 : vector<16x16xf32> to vector<16x16xbf16>
    %cst_29 = arith.constant dense<0.000000e+00> : vector<16x16xf32>
    %75 = tpu.matmul %70, %72, %cst_29 {dimension_numbers = #tpu.dot_dimension_numbers<[1], [1], [0], [0], [0, 0, 1, 0], [], []>} : vector<16x16xbf16>, vector<16x16xbf16>, vector<16x16xf32> -> vector<16x16xf32>
    %76 = arith.addf %75, %15 : vector<16x16xf32>
    %cst_30 = arith.constant dense<0xFF800000> : vector<16xf32>
    %77 = vector.multi_reduction <maximumf>, %76, %cst_30 [1] : vector<16x16xf32> to vector<16xf32>
    %78 = vector.shape_cast %77 : vector<16xf32> to vector<16x1xf32>
    %79 = vector.broadcast %78 : vector<16x1xf32> to vector<16x16xf32>
    %80 = arith.subf %76, %79 : vector<16x16xf32>
    %81 = math.exp %80 : vector<16x16xf32>
    %cst_31 = arith.constant dense<0.000000e+00> : vector<16xf32>
    %82 = vector.multi_reduction <add>, %81, %cst_31 [1] : vector<16x16xf32> to vector<16xf32>
    %83 = vector.shape_cast %82 : vector<16xf32> to vector<16x1xf32>
    %84 = tpu.reciprocal %83 {approx = true} : vector<16x1xf32> -> vector<16x1xf32>
    %85 = vector.broadcast %84 : vector<16x1xf32> to vector<16x16xf32>
    %86 = arith.mulf %81, %85 : vector<16x16xf32>
    %87 = arith.truncf %86 : vector<16x16xf32> to vector<16x16xbf16>
    %cst_32 = arith.constant dense<0.000000e+00> : vector<16x16xf32>
    %88 = tpu.matmul %87, %74, %cst_32 {dimension_numbers = #tpu.dot_dimension_numbers<[1], [0], [0], [1], [0, 0, 1, 1], [], []>} : vector<16x16xbf16>, vector<16x16xbf16>, vector<16x16xf32> -> vector<16x16xf32>
    %89 = tpu.concatenate %68, %88 in 1 : vector<16x16xf32>, vector<16x16xf32> -> vector<16x32xf32>
    %90 = arith.truncf %89 : vector<16x32xf32> to vector<16x32xbf16>
    %c0_33 = arith.constant 0 : index
    %c0_34 = arith.constant 0 : index
    %c0_35 = arith.constant 0 : index
    %91 = vector.load %arg8[%c0_33, %c0_34, %c0_35] : memref<2x32x32xbf16, #tpu.memory_space<vmem>>, vector<1x32x32xbf16>
    %92 = vector.shape_cast %91 : vector<1x32x32xbf16> to vector<32x32xbf16>
    %cst_36 = arith.constant dense<0.000000e+00> : vector<16x32xf32>
    %93 = tpu.matmul %90, %92, %cst_36 {dimension_numbers = #tpu.dot_dimension_numbers<[1], [0], [0], [1], [0, 0, 1, 1], [], []>} : vector<16x32xbf16>, vector<32x32xbf16>, vector<16x32xf32> -> vector<16x32xf32>
    %c0_37 = arith.constant 0 : index
    %c0_38 = arith.constant 0 : index
    %c0_39 = arith.constant 0 : index
    %94 = vector.load %arg9[%c0_37, %c0_38, %c0_39] : memref<2x1x32xf32, #tpu.memory_space<vmem>>, vector<1x1x32xf32>
    %95 = vector.shape_cast %94 : vector<1x1x32xf32> to vector<1x32xf32>
    %96 = vector.broadcast %95 : vector<1x32xf32> to vector<16x32xf32>
    %97 = arith.addf %93, %96 : vector<16x32xf32>
    %98 = arith.addf %40, %97 : vector<16x32xf32>
    %c0_40 = arith.constant 0 : index
    %c0_41 = arith.constant 0 : index
    %c0_42 = arith.constant 0 : index
    %99 = vector.load %arg10[%c0_40, %c0_41, %c0_42] : memref<2x1x32xf32, #tpu.memory_space<vmem>>, vector<1x1x32xf32>
    %100 = vector.shape_cast %99 : vector<1x1x32xf32> to vector<1x32xf32>
    %c0_43 = arith.constant 0 : index
    %c0_44 = arith.constant 0 : index
    %c0_45 = arith.constant 0 : index
    %101 = vector.load %arg11[%c0_43, %c0_44, %c0_45] : memref<2x1x32xf32, #tpu.memory_space<vmem>>, vector<1x1x32xf32>
    %102 = vector.shape_cast %101 : vector<1x1x32xf32> to vector<1x32xf32>
    %cst_46 = arith.constant dense<0.000000e+00> : vector<16xf32>
    %103 = vector.multi_reduction <add>, %98, %cst_46 [1] : vector<16x32xf32> to vector<16xf32>
    %104 = vector.shape_cast %103 : vector<16xf32> to vector<16x1xf32>
    %cst_47 = arith.constant 3.200000e+01 : f32
    %105 = vector.broadcast %cst_47 : f32 to vector<16x1xf32>
    %106 = arith.divf %104, %105 : vector<16x1xf32>
    %107 = vector.broadcast %106 : vector<16x1xf32> to vector<16x32xf32>
    %108 = arith.subf %98, %107 : vector<16x32xf32>
    %109 = arith.mulf %108, %108 : vector<16x32xf32>
    %cst_48 = arith.constant dense<0.000000e+00> : vector<16xf32>
    %110 = vector.multi_reduction <add>, %109, %cst_48 [1] : vector<16x32xf32> to vector<16xf32>
    %111 = vector.shape_cast %110 : vector<16xf32> to vector<16x1xf32>
    %cst_49 = arith.constant 3.200000e+01 : f32
    %112 = vector.broadcast %cst_49 : f32 to vector<16x1xf32>
    %113 = arith.divf %111, %112 : vector<16x1xf32>
    %114 = vector.broadcast %106 : vector<16x1xf32> to vector<16x32xf32>
    %115 = arith.subf %98, %114 : vector<16x32xf32>
    %cst_50 = arith.constant 9.99999996E-13 : f32
    %116 = vector.broadcast %cst_50 : f32 to vector<16x1xf32>
    %117 = arith.addf %113, %116 : vector<16x1xf32>
    %118 = math.rsqrt %117 : vector<16x1xf32>
    %119 = vector.broadcast %118 : vector<16x1xf32> to vector<16x32xf32>
    %120 = arith.mulf %115, %119 : vector<16x32xf32>
    %121 = vector.broadcast %100 : vector<1x32xf32> to vector<16x32xf32>
    %122 = arith.mulf %120, %121 : vector<16x32xf32>
    %123 = vector.broadcast %102 : vector<1x32xf32> to vector<16x32xf32>
    %124 = arith.addf %122, %123 : vector<16x32xf32>
    %125 = arith.truncf %124 : vector<16x32xf32> to vector<16x32xbf16>
    %c0_51 = arith.constant 0 : index
    %c0_52 = arith.constant 0 : index
    %c0_53 = arith.constant 0 : index
    %126 = vector.load %arg12[%c0_51, %c0_52, %c0_53] : memref<2x32x64xbf16, #tpu.memory_space<vmem>>, vector<1x32x64xbf16>
    %127 = vector.shape_cast %126 : vector<1x32x64xbf16> to vector<32x64xbf16>
    %cst_54 = arith.constant dense<0.000000e+00> : vector<16x64xf32>
    %128 = tpu.matmul %125, %127, %cst_54 {dimension_numbers = #tpu.dot_dimension_numbers<[1], [0], [0], [1], [0, 0, 1, 1], [], []>} : vector<16x32xbf16>, vector<32x64xbf16>, vector<16x64xf32> -> vector<16x64xf32>
    %c0_55 = arith.constant 0 : index
    %c0_56 = arith.constant 0 : index
    %c0_57 = arith.constant 0 : index
    %129 = vector.load %arg13[%c0_55, %c0_56, %c0_57] : memref<2x1x64xf32, #tpu.memory_space<vmem>>, vector<1x1x64xf32>
    %130 = vector.shape_cast %129 : vector<1x1x64xf32> to vector<1x64xf32>
    %131 = vector.broadcast %130 : vector<1x64xf32> to vector<16x64xf32>
    %132 = arith.addf %128, %131 : vector<16x64xf32>
    %cst_58 = arith.constant 5.000000e-01 : f32
    %133 = vector.broadcast %cst_58 : f32 to vector<16x64xf32>
    %134 = arith.mulf %133, %132 : vector<16x64xf32>
    %cst_59 = arith.constant 2.000000e+00 : f32
    %135 = math.sqrt %cst_59 : f32
    %136 = vector.broadcast %135 : f32 to vector<16x64xf32>
    %137 = arith.divf %132, %136 : vector<16x64xf32>
    %138 = math.erf %137 : vector<16x64xf32>
    %cst_60 = arith.constant 1.000000e+00 : f32
    %139 = vector.broadcast %cst_60 : f32 to vector<16x64xf32>
    %140 = arith.addf %139, %138 : vector<16x64xf32>
    %141 = arith.mulf %134, %140 : vector<16x64xf32>
    %142 = arith.truncf %141 : vector<16x64xf32> to vector<16x64xbf16>
    %c0_61 = arith.constant 0 : index
    %c0_62 = arith.constant 0 : index
    %c0_63 = arith.constant 0 : index
    %143 = vector.load %arg14[%c0_61, %c0_62, %c0_63] : memref<2x64x32xbf16, #tpu.memory_space<vmem>>, vector<1x64x32xbf16>
    %144 = vector.shape_cast %143 : vector<1x64x32xbf16> to vector<64x32xbf16>
    %cst_64 = arith.constant dense<0.000000e+00> : vector<16x32xf32>
    %145 = tpu.matmul %142, %144, %cst_64 {dimension_numbers = #tpu.dot_dimension_numbers<[1], [0], [0], [1], [0, 0, 1, 1], [], []>} : vector<16x64xbf16>, vector<64x32xbf16>, vector<16x32xf32> -> vector<16x32xf32>
    %c0_65 = arith.constant 0 : index
    %c0_66 = arith.constant 0 : index
    %c0_67 = arith.constant 0 : index
    %146 = vector.load %arg15[%c0_65, %c0_66, %c0_67] : memref<2x1x32xf32, #tpu.memory_space<vmem>>, vector<1x1x32xf32>
    %147 = vector.shape_cast %146 : vector<1x1x32xf32> to vector<1x32xf32>
    %148 = vector.broadcast %147 : vector<1x32xf32> to vector<16x32xf32>
    %149 = arith.addf %145, %148 : vector<16x32xf32>
    %150 = arith.addf %124, %149 : vector<16x32xf32>
    %c0_68 = arith.constant 0 : index
    %c0_69 = arith.constant 0 : index
    %c0_70 = arith.constant 0 : index
    %151 = vector.load %arg16[%c0_68, %c0_69, %c0_70] : memref<2x1x32xf32, #tpu.memory_space<vmem>>, vector<1x1x32xf32>
    %152 = vector.shape_cast %151 : vector<1x1x32xf32> to vector<1x32xf32>
    %c0_71 = arith.constant 0 : index
    %c0_72 = arith.constant 0 : index
    %c0_73 = arith.constant 0 : index
    %153 = vector.load %arg17[%c0_71, %c0_72, %c0_73] : memref<2x1x32xf32, #tpu.memory_space<vmem>>, vector<1x1x32xf32>
    %154 = vector.shape_cast %153 : vector<1x1x32xf32> to vector<1x32xf32>
    %cst_74 = arith.constant dense<0.000000e+00> : vector<16xf32>
    %155 = vector.multi_reduction <add>, %150, %cst_74 [1] : vector<16x32xf32> to vector<16xf32>
    %156 = vector.shape_cast %155 : vector<16xf32> to vector<16x1xf32>
    %cst_75 = arith.constant 3.200000e+01 : f32
    %157 = vector.broadcast %cst_75 : f32 to vector<16x1xf32>
    %158 = arith.divf %156, %157 : vector<16x1xf32>
    %159 = vector.broadcast %158 : vector<16x1xf32> to vector<16x32xf32>
    %160 = arith.subf %150, %159 : vector<16x32xf32>
    %161 = arith.mulf %160, %160 : vector<16x32xf32>
    %cst_76 = arith.constant dense<0.000000e+00> : vector<16xf32>
    %162 = vector.multi_reduction <add>, %161, %cst_76 [1] : vector<16x32xf32> to vector<16xf32>
    %163 = vector.shape_cast %162 : vector<16xf32> to vector<16x1xf32>
    %cst_77 = arith.constant 3.200000e+01 : f32
    %164 = vector.broadcast %cst_77 : f32 to vector<16x1xf32>
    %165 = arith.divf %163, %164 : vector<16x1xf32>
    %166 = vector.broadcast %158 : vector<16x1xf32> to vector<16x32xf32>
    %167 = arith.subf %150, %166 : vector<16x32xf32>
    %cst_78 = arith.constant 9.99999996E-13 : f32
    %168 = vector.broadcast %cst_78 : f32 to vector<16x1xf32>
    %169 = arith.addf %165, %168 : vector<16x1xf32>
    %170 = math.rsqrt %169 : vector<16x1xf32>
    %171 = vector.broadcast %170 : vector<16x1xf32> to vector<16x32xf32>
    %172 = arith.mulf %167, %171 : vector<16x32xf32>
    %173 = vector.broadcast %152 : vector<1x32xf32> to vector<16x32xf32>
    %174 = arith.mulf %172, %173 : vector<16x32xf32>
    %175 = vector.broadcast %154 : vector<1x32xf32> to vector<16x32xf32>
    %176 = arith.addf %174, %175 : vector<16x32xf32>
    %177 = arith.truncf %176 : vector<16x32xf32> to vector<16x32xbf16>
    %c1 = arith.constant 1 : index
    %c0_79 = arith.constant 0 : index
    %c0_80 = arith.constant 0 : index
    %178 = vector.load %arg6[%c1, %c0_79, %c0_80] : memref<2x32x96xbf16, #tpu.memory_space<vmem>>, vector<1x32x96xbf16>
    %179 = vector.shape_cast %178 : vector<1x32x96xbf16> to vector<32x96xbf16>
    %cst_81 = arith.constant dense<0.000000e+00> : vector<16x96xf32>
    %180 = tpu.matmul %177, %179, %cst_81 {dimension_numbers = #tpu.dot_dimension_numbers<[1], [0], [0], [1], [0, 0, 1, 1], [], []>} : vector<16x32xbf16>, vector<32x96xbf16>, vector<16x96xf32> -> vector<16x96xf32>
    %c1_82 = arith.constant 1 : index
    %c0_83 = arith.constant 0 : index
    %c0_84 = arith.constant 0 : index
    %181 = vector.load %arg7[%c1_82, %c0_83, %c0_84] : memref<2x1x96xf32, #tpu.memory_space<vmem>>, vector<1x1x96xf32>
    %182 = vector.shape_cast %181 : vector<1x1x96xf32> to vector<1x96xf32>
    %183 = vector.broadcast %182 : vector<1x96xf32> to vector<16x96xf32>
    %184 = arith.addf %180, %183 : vector<16x96xf32>
    %185 = vector.extract_strided_slice %184 {offsets = [0, 0], sizes = [16, 16], strides = [1, 1]} : vector<16x96xf32> to vector<16x16xf32>
    %186 = arith.truncf %185 : vector<16x16xf32> to vector<16x16xbf16>
    %187 = vector.extract_strided_slice %184 {offsets = [0, 32], sizes = [16, 16], strides = [1, 1]} : vector<16x96xf32> to vector<16x16xf32>
    %188 = arith.truncf %187 : vector<16x16xf32> to vector<16x16xbf16>
    %189 = vector.extract_strided_slice %184 {offsets = [0, 64], sizes = [16, 16], strides = [1, 1]} : vector<16x96xf32> to vector<16x16xf32>
    %190 = arith.truncf %189 : vector<16x16xf32> to vector<16x16xbf16>
    %cst_85 = arith.constant dense<0.000000e+00> : vector<16x16xf32>
    %191 = tpu.matmul %186, %188, %cst_85 {dimension_numbers = #tpu.dot_dimension_numbers<[1], [1], [0], [0], [0, 0, 1, 0], [], []>} : vector<16x16xbf16>, vector<16x16xbf16>, vector<16x16xf32> -> vector<16x16xf32>
    %192 = arith.addf %191, %15 : vector<16x16xf32>
    %cst_86 = arith.constant dense<0xFF800000> : vector<16xf32>
    %193 = vector.multi_reduction <maximumf>, %192, %cst_86 [1] : vector<16x16xf32> to vector<16xf32>
    %194 = vector.shape_cast %193 : vector<16xf32> to vector<16x1xf32>
    %195 = vector.broadcast %194 : vector<16x1xf32> to vector<16x16xf32>
    %196 = arith.subf %192, %195 : vector<16x16xf32>
    %197 = math.exp %196 : vector<16x16xf32>
    %cst_87 = arith.constant dense<0.000000e+00> : vector<16xf32>
    %198 = vector.multi_reduction <add>, %197, %cst_87 [1] : vector<16x16xf32> to vector<16xf32>
    %199 = vector.shape_cast %198 : vector<16xf32> to vector<16x1xf32>
    %200 = tpu.reciprocal %199 {approx = true} : vector<16x1xf32> -> vector<16x1xf32>
    %201 = vector.broadcast %200 : vector<16x1xf32> to vector<16x16xf32>
    %202 = arith.mulf %197, %201 : vector<16x16xf32>
    %203 = arith.truncf %202 : vector<16x16xf32> to vector<16x16xbf16>
    %cst_88 = arith.constant dense<0.000000e+00> : vector<16x16xf32>
    %204 = tpu.matmul %203, %190, %cst_88 {dimension_numbers = #tpu.dot_dimension_numbers<[1], [0], [0], [1], [0, 0, 1, 1], [], []>} : vector<16x16xbf16>, vector<16x16xbf16>, vector<16x16xf32> -> vector<16x16xf32>
    %205 = vector.extract_strided_slice %184 {offsets = [0, 16], sizes = [16, 16], strides = [1, 1]} : vector<16x96xf32> to vector<16x16xf32>
    %206 = arith.truncf %205 : vector<16x16xf32> to vector<16x16xbf16>
    %207 = vector.extract_strided_slice %184 {offsets = [0, 48], sizes = [16, 16], strides = [1, 1]} : vector<16x96xf32> to vector<16x16xf32>
    %208 = arith.truncf %207 : vector<16x16xf32> to vector<16x16xbf16>
    %209 = vector.extract_strided_slice %184 {offsets = [0, 80], sizes = [16, 16], strides = [1, 1]} : vector<16x96xf32> to vector<16x16xf32>
    %210 = arith.truncf %209 : vector<16x16xf32> to vector<16x16xbf16>
    %cst_89 = arith.constant dense<0.000000e+00> : vector<16x16xf32>
    %211 = tpu.matmul %206, %208, %cst_89 {dimension_numbers = #tpu.dot_dimension_numbers<[1], [1], [0], [0], [0, 0, 1, 0], [], []>} : vector<16x16xbf16>, vector<16x16xbf16>, vector<16x16xf32> -> vector<16x16xf32>
    %212 = arith.addf %211, %15 : vector<16x16xf32>
    %cst_90 = arith.constant dense<0xFF800000> : vector<16xf32>
    %213 = vector.multi_reduction <maximumf>, %212, %cst_90 [1] : vector<16x16xf32> to vector<16xf32>
    %214 = vector.shape_cast %213 : vector<16xf32> to vector<16x1xf32>
    %215 = vector.broadcast %214 : vector<16x1xf32> to vector<16x16xf32>
    %216 = arith.subf %212, %215 : vector<16x16xf32>
    %217 = math.exp %216 : vector<16x16xf32>
    %cst_91 = arith.constant dense<0.000000e+00> : vector<16xf32>
    %218 = vector.multi_reduction <add>, %217, %cst_91 [1] : vector<16x16xf32> to vector<16xf32>
    %219 = vector.shape_cast %218 : vector<16xf32> to vector<16x1xf32>
    %220 = tpu.reciprocal %219 {approx = true} : vector<16x1xf32> -> vector<16x1xf32>
    %221 = vector.broadcast %220 : vector<16x1xf32> to vector<16x16xf32>
    %222 = arith.mulf %217, %221 : vector<16x16xf32>
    %223 = arith.truncf %222 : vector<16x16xf32> to vector<16x16xbf16>
    %cst_92 = arith.constant dense<0.000000e+00> : vector<16x16xf32>
    %224 = tpu.matmul %223, %210, %cst_92 {dimension_numbers = #tpu.dot_dimension_numbers<[1], [0], [0], [1], [0, 0, 1, 1], [], []>} : vector<16x16xbf16>, vector<16x16xbf16>, vector<16x16xf32> -> vector<16x16xf32>
    %225 = tpu.concatenate %204, %224 in 1 : vector<16x16xf32>, vector<16x16xf32> -> vector<16x32xf32>
    %226 = arith.truncf %225 : vector<16x32xf32> to vector<16x32xbf16>
    %c1_93 = arith.constant 1 : index
    %c0_94 = arith.constant 0 : index
    %c0_95 = arith.constant 0 : index
    %227 = vector.load %arg8[%c1_93, %c0_94, %c0_95] : memref<2x32x32xbf16, #tpu.memory_space<vmem>>, vector<1x32x32xbf16>
    %228 = vector.shape_cast %227 : vector<1x32x32xbf16> to vector<32x32xbf16>
    %cst_96 = arith.constant dense<0.000000e+00> : vector<16x32xf32>
    %229 = tpu.matmul %226, %228, %cst_96 {dimension_numbers = #tpu.dot_dimension_numbers<[1], [0], [0], [1], [0, 0, 1, 1], [], []>} : vector<16x32xbf16>, vector<32x32xbf16>, vector<16x32xf32> -> vector<16x32xf32>
    %c1_97 = arith.constant 1 : index
    %c0_98 = arith.constant 0 : index
    %c0_99 = arith.constant 0 : index
    %230 = vector.load %arg9[%c1_97, %c0_98, %c0_99] : memref<2x1x32xf32, #tpu.memory_space<vmem>>, vector<1x1x32xf32>
    %231 = vector.shape_cast %230 : vector<1x1x32xf32> to vector<1x32xf32>
    %232 = vector.broadcast %231 : vector<1x32xf32> to vector<16x32xf32>
    %233 = arith.addf %229, %232 : vector<16x32xf32>
    %234 = arith.addf %176, %233 : vector<16x32xf32>
    %c1_100 = arith.constant 1 : index
    %c0_101 = arith.constant 0 : index
    %c0_102 = arith.constant 0 : index
    %235 = vector.load %arg10[%c1_100, %c0_101, %c0_102] : memref<2x1x32xf32, #tpu.memory_space<vmem>>, vector<1x1x32xf32>
    %236 = vector.shape_cast %235 : vector<1x1x32xf32> to vector<1x32xf32>
    %c1_103 = arith.constant 1 : index
    %c0_104 = arith.constant 0 : index
    %c0_105 = arith.constant 0 : index
    %237 = vector.load %arg11[%c1_103, %c0_104, %c0_105] : memref<2x1x32xf32, #tpu.memory_space<vmem>>, vector<1x1x32xf32>
    %238 = vector.shape_cast %237 : vector<1x1x32xf32> to vector<1x32xf32>
    %cst_106 = arith.constant dense<0.000000e+00> : vector<16xf32>
    %239 = vector.multi_reduction <add>, %234, %cst_106 [1] : vector<16x32xf32> to vector<16xf32>
    %240 = vector.shape_cast %239 : vector<16xf32> to vector<16x1xf32>
    %cst_107 = arith.constant 3.200000e+01 : f32
    %241 = vector.broadcast %cst_107 : f32 to vector<16x1xf32>
    %242 = arith.divf %240, %241 : vector<16x1xf32>
    %243 = vector.broadcast %242 : vector<16x1xf32> to vector<16x32xf32>
    %244 = arith.subf %234, %243 : vector<16x32xf32>
    %245 = arith.mulf %244, %244 : vector<16x32xf32>
    %cst_108 = arith.constant dense<0.000000e+00> : vector<16xf32>
    %246 = vector.multi_reduction <add>, %245, %cst_108 [1] : vector<16x32xf32> to vector<16xf32>
    %247 = vector.shape_cast %246 : vector<16xf32> to vector<16x1xf32>
    %cst_109 = arith.constant 3.200000e+01 : f32
    %248 = vector.broadcast %cst_109 : f32 to vector<16x1xf32>
    %249 = arith.divf %247, %248 : vector<16x1xf32>
    %250 = vector.broadcast %242 : vector<16x1xf32> to vector<16x32xf32>
    %251 = arith.subf %234, %250 : vector<16x32xf32>
    %cst_110 = arith.constant 9.99999996E-13 : f32
    %252 = vector.broadcast %cst_110 : f32 to vector<16x1xf32>
    %253 = arith.addf %249, %252 : vector<16x1xf32>
    %254 = math.rsqrt %253 : vector<16x1xf32>
    %255 = vector.broadcast %254 : vector<16x1xf32> to vector<16x32xf32>
    %256 = arith.mulf %251, %255 : vector<16x32xf32>
    %257 = vector.broadcast %236 : vector<1x32xf32> to vector<16x32xf32>
    %258 = arith.mulf %256, %257 : vector<16x32xf32>
    %259 = vector.broadcast %238 : vector<1x32xf32> to vector<16x32xf32>
    %260 = arith.addf %258, %259 : vector<16x32xf32>
    %261 = arith.truncf %260 : vector<16x32xf32> to vector<16x32xbf16>
    %c1_111 = arith.constant 1 : index
    %c0_112 = arith.constant 0 : index
    %c0_113 = arith.constant 0 : index
    %262 = vector.load %arg12[%c1_111, %c0_112, %c0_113] : memref<2x32x64xbf16, #tpu.memory_space<vmem>>, vector<1x32x64xbf16>
    %263 = vector.shape_cast %262 : vector<1x32x64xbf16> to vector<32x64xbf16>
    %cst_114 = arith.constant dense<0.000000e+00> : vector<16x64xf32>
    %264 = tpu.matmul %261, %263, %cst_114 {dimension_numbers = #tpu.dot_dimension_numbers<[1], [0], [0], [1], [0, 0, 1, 1], [], []>} : vector<16x32xbf16>, vector<32x64xbf16>, vector<16x64xf32> -> vector<16x64xf32>
    %c1_115 = arith.constant 1 : index
    %c0_116 = arith.constant 0 : index
    %c0_117 = arith.constant 0 : index
    %265 = vector.load %arg13[%c1_115, %c0_116, %c0_117] : memref<2x1x64xf32, #tpu.memory_space<vmem>>, vector<1x1x64xf32>
    %266 = vector.shape_cast %265 : vector<1x1x64xf32> to vector<1x64xf32>
    %267 = vector.broadcast %266 : vector<1x64xf32> to vector<16x64xf32>
    %268 = arith.addf %264, %267 : vector<16x64xf32>
    %cst_118 = arith.constant 5.000000e-01 : f32
    %269 = vector.broadcast %cst_118 : f32 to vector<16x64xf32>
    %270 = arith.mulf %269, %268 : vector<16x64xf32>
    %cst_119 = arith.constant 2.000000e+00 : f32
    %271 = math.sqrt %cst_119 : f32
    %272 = vector.broadcast %271 : f32 to vector<16x64xf32>
    %273 = arith.divf %268, %272 : vector<16x64xf32>
    %274 = math.erf %273 : vector<16x64xf32>
    %cst_120 = arith.constant 1.000000e+00 : f32
    %275 = vector.broadcast %cst_120 : f32 to vector<16x64xf32>
    %276 = arith.addf %275, %274 : vector<16x64xf32>
    %277 = arith.mulf %270, %276 : vector<16x64xf32>
    %278 = arith.truncf %277 : vector<16x64xf32> to vector<16x64xbf16>
    %c1_121 = arith.constant 1 : index
    %c0_122 = arith.constant 0 : index
    %c0_123 = arith.constant 0 : index
    %279 = vector.load %arg14[%c1_121, %c0_122, %c0_123] : memref<2x64x32xbf16, #tpu.memory_space<vmem>>, vector<1x64x32xbf16>
    %280 = vector.shape_cast %279 : vector<1x64x32xbf16> to vector<64x32xbf16>
    %cst_124 = arith.constant dense<0.000000e+00> : vector<16x32xf32>
    %281 = tpu.matmul %278, %280, %cst_124 {dimension_numbers = #tpu.dot_dimension_numbers<[1], [0], [0], [1], [0, 0, 1, 1], [], []>} : vector<16x64xbf16>, vector<64x32xbf16>, vector<16x32xf32> -> vector<16x32xf32>
    %c1_125 = arith.constant 1 : index
    %c0_126 = arith.constant 0 : index
    %c0_127 = arith.constant 0 : index
    %282 = vector.load %arg15[%c1_125, %c0_126, %c0_127] : memref<2x1x32xf32, #tpu.memory_space<vmem>>, vector<1x1x32xf32>
    %283 = vector.shape_cast %282 : vector<1x1x32xf32> to vector<1x32xf32>
    %284 = vector.broadcast %283 : vector<1x32xf32> to vector<16x32xf32>
    %285 = arith.addf %281, %284 : vector<16x32xf32>
    %286 = arith.addf %260, %285 : vector<16x32xf32>
    %c1_128 = arith.constant 1 : index
    %c0_129 = arith.constant 0 : index
    %c0_130 = arith.constant 0 : index
    %287 = vector.load %arg16[%c1_128, %c0_129, %c0_130] : memref<2x1x32xf32, #tpu.memory_space<vmem>>, vector<1x1x32xf32>
    %288 = vector.shape_cast %287 : vector<1x1x32xf32> to vector<1x32xf32>
    %c1_131 = arith.constant 1 : index
    %c0_132 = arith.constant 0 : index
    %c0_133 = arith.constant 0 : index
    %289 = vector.load %arg17[%c1_131, %c0_132, %c0_133] : memref<2x1x32xf32, #tpu.memory_space<vmem>>, vector<1x1x32xf32>
    %290 = vector.shape_cast %289 : vector<1x1x32xf32> to vector<1x32xf32>
    %cst_134 = arith.constant dense<0.000000e+00> : vector<16xf32>
    %291 = vector.multi_reduction <add>, %286, %cst_134 [1] : vector<16x32xf32> to vector<16xf32>
    %292 = vector.shape_cast %291 : vector<16xf32> to vector<16x1xf32>
    %cst_135 = arith.constant 3.200000e+01 : f32
    %293 = vector.broadcast %cst_135 : f32 to vector<16x1xf32>
    %294 = arith.divf %292, %293 : vector<16x1xf32>
    %295 = vector.broadcast %294 : vector<16x1xf32> to vector<16x32xf32>
    %296 = arith.subf %286, %295 : vector<16x32xf32>
    %297 = arith.mulf %296, %296 : vector<16x32xf32>
    %cst_136 = arith.constant dense<0.000000e+00> : vector<16xf32>
    %298 = vector.multi_reduction <add>, %297, %cst_136 [1] : vector<16x32xf32> to vector<16xf32>
    %299 = vector.shape_cast %298 : vector<16xf32> to vector<16x1xf32>
    %cst_137 = arith.constant 3.200000e+01 : f32
    %300 = vector.broadcast %cst_137 : f32 to vector<16x1xf32>
    %301 = arith.divf %299, %300 : vector<16x1xf32>
    %302 = vector.broadcast %294 : vector<16x1xf32> to vector<16x32xf32>
    %303 = arith.subf %286, %302 : vector<16x32xf32>
    %cst_138 = arith.constant 9.99999996E-13 : f32
    %304 = vector.broadcast %cst_138 : f32 to vector<16x1xf32>
    %305 = arith.addf %301, %304 : vector<16x1xf32>
    %306 = math.rsqrt %305 : vector<16x1xf32>
    %307 = vector.broadcast %306 : vector<16x1xf32> to vector<16x32xf32>
    %308 = arith.mulf %303, %307 : vector<16x32xf32>
    %309 = vector.broadcast %288 : vector<1x32xf32> to vector<16x32xf32>
    %310 = arith.mulf %308, %309 : vector<16x32xf32>
    %311 = vector.broadcast %290 : vector<1x32xf32> to vector<16x32xf32>
    %312 = arith.addf %310, %311 : vector<16x32xf32>
    %313 = arith.truncf %312 : vector<16x32xf32> to vector<16x32xbf16>
    %c0_139 = arith.constant 0 : index
    %c0_140 = arith.constant 0 : index
    %314 = vector.load %arg18[%c0_139, %c0_140] : memref<32x128xbf16, #tpu.memory_space<vmem>>, vector<32x128xbf16>
    %cst_141 = arith.constant dense<0.000000e+00> : vector<16x128xf32>
    %315 = tpu.matmul %313, %314, %cst_141 {dimension_numbers = #tpu.dot_dimension_numbers<[1], [0], [0], [1], [0, 0, 1, 1], [], []>} : vector<16x32xbf16>, vector<32x128xbf16>, vector<16x128xf32> -> vector<16x128xf32>
    %c0_142 = arith.constant 0 : index
    %c0_143 = arith.constant 0 : index
    %316 = vector.load %arg19[%c0_142, %c0_143] : memref<1x128xf32, #tpu.memory_space<vmem>>, vector<1x128xf32>
    %317 = vector.broadcast %316 : vector<1x128xf32> to vector<16x128xf32>
    %318 = arith.addf %315, %317 : vector<16x128xf32>
    %c0_144 = arith.constant 0 : index
    %c0_145 = arith.constant 0 : index
    %319 = vector.load %arg20[%c0_144, %c0_145] : memref<16x128xf32, #tpu.memory_space<vmem>>, vector<16x128xf32>
    tpu.vector_store %arg20[%c0_144, %c0_145], %318 {strides = array<i32>} : memref<16x128xf32, #tpu.memory_space<vmem>>, vector<16x128xf32>,
    return
  }
}

</mosaic_0001>

<bundles_post_ra>
// kernel: bert_linear_forward.1
= control target key start
LH: loop header
LB: loop body
LE: loop exit
PB: predicated region body
PF: predicated region fallthrough
CT: control target
= control target key end

     0   :  { %vm104_vm0 = vcmask 261120   ;;  %v1889_v14 = vmov 0.0   ;;  %vm1890_vm1 = vmmov 0   ;;  %s1892_s25 = smov 96   ;;  %v1894_v42 = vmov 0   ;;  %s1897_s28 = smov 16   ;;  %s2331_s0 = inlined_call_operand.vmem [shape: f32[16,32], index: 0, kind: input, shape index: {}]   ;;  %s2332_s6 = inlined_call_operand.vmem [shape: bf16[2,32,96], index: 6, kind: input, shape index: {}]   ;;  %s2333_s4 = inlined_call_operand.vmem [shape: f32[1,32], index: 4, kind: input, shape index: {}]   ;;  %s2334_s5 = inlined_call_operand.vmem [shape: f32[1,32], index: 5, kind: input, shape index: {}]   ;;  %s2335_s7 = inlined_call_operand.vmem [shape: f32[2,1,96], index: 7, kind: input, shape index: {}]   ;;  %s2336_s2 = inlined_call_operand.vmem [shape: f32[16,1], index: 2, kind: input, shape index: {}]   ;;  %s2337_s3 = inlined_call_operand.vmem [shape: f32[1,16], index: 3, kind: input, shape index: {}]   ;;  %s2338_s1 = inlined_call_operand.vmem [shape: f32[1,16], index: 1, kind: input, shape index: {}]   ;;  %s2339_s8 = inlined_call_operand.vmem [shape: bf16[2,32,32], index: 8, kind: input, shape index: {}]   ;;  %s2340_s9 = inlined_call_operand.vmem [shape: f32[2,1,32], index: 9, kind: input, shape index: {}]   ;;  %s2341_s12 = inlined_call_operand.vmem [shape: bf16[2,32,64], index: 12, kind: input, shape index: {}]   ;;  %s2342_s10 = inlined_call_operand.vmem [shape: f32[2,1,32], index: 10, kind: input, shape index: {}]   ;;  %s2343_s11 = inlined_call_operand.vmem [shape: f32[2,1,32], index: 11, kind: input, shape index: {}]   ;;  %s2344_s14 = inlined_call_operand.vmem [shape: bf16[2,64,32], index: 14, kind: input, shape index: {}]   ;;  %s2345_s13 = inlined_call_operand.vmem [shape: f32[2,1,64], index: 13, kind: input, shape index: {}]   ;;  %s2346_s15 = inlined_call_operand.vmem [shape: f32[2,1,32], index: 15, kind: input, shape index: {}]   ;;  %s2347_s16 = inlined_call_operand.vmem [shape: f32[2,1,32], index: 16, kind: input, shape index: {}]   ;;  %s2348_s17 = inlined_call_operand.vmem [shape: f32[2,1,32], index: 17, kind: input, shape index: {}]   ;;  %s2349_s18 = inlined_call_operand.vmem [shape: bf16[32,128], index: 18, kind: input, shape index: {}]   ;;  %s2350_s19 = inlined_call_operand.vmem [shape: f32[1,128], index: 19, kind: input, shape index: {}]   ;;  %s2351_s20 = inlined_call_operand.vmem [shape: f32[16,128], index: 20, kind: output, shape index: {}]  }
   0x1   :  { %2355 = sst [smem:[#allocation2_spill]] %s2331_s0  ;;  %1658 = vmatprep.subr.bf16.mxu0 %v1889_v14  ;;  %1662 = vmatprep.mubr.msk.bf16.mxu0 %vm1890_vm1, %v1889_v14  ;;  %v67_v43 = vld [vmem:[%s2336_s2 + $0x8] sm:$0xff]  ;;  %v66_v44 = vld [vmem:[%s2336_s2] sm:$0xff]  ;;  %vm220_vm2 = vcmask 130048   ;;  %vm702_vm5 = vcmask 523264  }
   0x2   :  { %2356 = sst [smem:[#allocation3_spill]] %s2332_s6  ;;  %1666 = vmatprep.subr.bf16.mxu1 %v1889_v14  ;;  %1668 = vmatprep.mubr.msk.bf16.mxu1 %vm1890_vm1, %v1889_v14  ;;  %v1521_v50 = vld [vmem:[%s2337_s3] ss:$0 sm:$0xff]  ;;  %s1896_s3 = smov 64  }
   0x3   :  { %2357 = sst [smem:[#allocation4_spill]] %s2333_s4  ;;  %s1891_s4 = smov 80   ;;  %1796 = vset.pattern.permute.xlu0 %v1894_v42  ;;  %1795 = vset.pattern.permute.xlu1 %v1894_v42  ;;  %v1522_v52 = vld [vmem:[%s2338_s1] ss:$0 sm:$0xff] }
   0x4   :  { %2358 = sst [smem:[#allocation5_spill]] %s2334_s5  ;;  %s1893_s5 = smov 112  }
   0x5   :  { %2359 = sst [smem:[#allocation6_spill]] %s2335_s7  ;;  %s1895_s1 = smov 48  }
   0x6   :  { %s2360_s23 = sld [smem:[#allocation2_spill]] }
   0x7   :  { %s2361_s26 = sld [smem:[#allocation3_spill]] }
   0x8   :  { %s2362_s30 = sld [smem:[#allocation4_spill]] }
   0x9   :  { %s2363_s6 = sld [smem:[#allocation5_spill]] }
   0xa   :  { %s2364_s24 = sld [smem:[#allocation6_spill]] }
   0xc   :  { %v100_v0 = vld [vmem:[%s2360_s23] sm:$0xff]  ;;  %v101_v1 = vld [vmem:[%s2360_s23 + $0x8] sm:$0xff] }
   0xd   :  { %v105_v2 = vsel %vm104_vm0, %v100_v0, 0.0  ;;  %v108_v3 = vsel %vm104_vm0, %v101_v1, 0.0  ;;  %v1807_v15 = vld [vmem:[%s2361_s26 + $0x8] sm:$0xff]   ;;  %v1808_v16 = vld [vmem:[%s2361_s26] sm:$0xff]  }
   0xe   :  { %106 = vadd.xlane.f32.xlu0 %v105_v2  ;;  %1659 = vmatpush3.bf16.msra.mxu0 %v1807_v15  ;;  %v1525_v25 = vld [vmem:[%s2362_s30] ss:$0 sm:$0xff] }
   0xf   :  { %1660 = vmatprep.subr.bf16.mxu0 %v1889_v14  ;;  %v1526_v29 = vld [vmem:[%s2363_s6] ss:$0 sm:$0xff] }
  0x10   :  { %v1527_v35 = vld [vmem:[%s2364_s24] ss:$0 sm:$0xff] }
  0x12   :  { %109 = vadd.xlane.f32.xlu0 %v108_v3  ;;  %1661 = vmatpush3.bf16.msra.mxu0 %v1808_v16 }
  0x13   :  { %1672 = vmatprep.subr.bf16.mxu0 %v1889_v14 }
  0x97   :  { %v107_v4 = vpop.xlane.xlu0 %106 }
  0x98   :  { %v112_v5 = vmul.f32 0.03125, %v107_v4 }
  0x9a   :  { %v114_v6 = vsub.f32 %v100_v0, %v112_v5 }
  0x9b   :  { %v110_v7 = vpop.xlane.xlu0 %109 }
  0x9c   :  { %v113_v8 = vmul.f32 0.03125, %v110_v7  ;;  %v116_v9 = vmul.f32 %v114_v6, %v114_v6 }
  0x9e   :  { %v115_v10 = vsub.f32 %v101_v1, %v113_v8  ;;  %v118_v11 = vsel %vm104_vm0, %v116_v9, 0.0 }
  0x9f   :  { %119 = vadd.xlane.f32.xlu1 %v118_v11 }
  0xa0   :  { %v117_v12 = vmul.f32 %v115_v10, %v115_v10 }
  0xa2   :  { %v121_v13 = vsel %vm104_vm0, %v117_v12, 0.0 }
  0xa3   :  { %122 = vadd.xlane.f32.xlu1 %v121_v13 }
 0x128   :  { %v120_v17 = vpop.xlane.xlu1 %119 }
 0x129   :  { %v124_v18 = vmul.f32 0.03125, %v120_v17 }
 0x12b   :  { %v126_v19 = vadd.f32 1e-12, %v124_v18 }
 0x12c   :  { %v123_v20 = vpop.xlane.xlu1 %122 }
 0x12d   :  { %1829 = vrsqrt.f32 %v126_v19  ;;  %v125_v21 = vmul.f32 0.03125, %v123_v20 }
 0x12f   :  { %v127_v22 = vadd.f32 1e-12, %v125_v21 }
 0x131   :  { %1831 = vrsqrt.f32 %v127_v22 }
 0x13a   :  { %v1830_v23 = vpop.eup %1829 }
 0x13b   :  { %v130_v24 = vmul.f32 %v1830_v23, %v114_v6 }
 0x13d   :  { %v138_v28 = vmul.f32 %v1525_v25, %v130_v24 }
 0x13e   :  { %v1832_v26 = vpop.eup %1831 }
 0x13f   :  { %v131_v27 = vmul.f32 %v1832_v26, %v115_v10  ;;  %v2033_v31 = vadd.f32 %v1526_v29, %v138_v28 }
 0x141   :  { %v139_v30 = vmul.f32 %v1525_v25, %v131_v27 }
 0x143   :  { %v2035_v32 = vadd.f32 %v1526_v29, %v139_v30 }
 0x145   :  { %v148_v33 = vpack.c.bf16 %v2035_v32, %v2033_v31 }
 0x147   :  { %1663 = vmatmul.mubr.msk.bf16.vlgmr.msra.gmra.mxu0 %vm104_vm0, %v148_v33 }
 0x148   :  { %1674 = vmatprep.mubr.msk.bf16.mxu0 %vm1890_vm1, %v1889_v14 }
 0x207   :  { %v209_v34 = vpop.f32.mrf.mxu0 }
 0x208   :  { %v210_v38 = vadd.f32 %v1527_v35, %v209_v34 }
 0x209   :  { %v1664_v36 = vpop.f32.mrf.mxu0 }
 0x20b   :  { %v212_v37 = vpop.f32.mrf.mxu0 }
 0x20c   :  { %v213_v39 = vadd.f32 %v1527_v35, %v212_v37 }
 0x20d   :  { %v1665_v40 = vpop.f32.mrf.mxu0 }
 0x20e   :  { %v2045_v41 = vpack.c.bf16 %v213_v39, %v210_v38 }
 0x210   :  { %340 = vrot.lane.b32.xlu1 %v2045_v41, %s1891_s4  ;;  %218 = vrot.lane.b32.xlu0 %v2045_v41, %s1892_s25 }
 0x214   :  { %338 = vrot.lane.b32.xlu1 %v2045_v41, %s1893_s5  ;;  %75 = vperm.xlu0 %1796, %v67_v43  }
 0x218   :  { %70 = vperm.xlu1 %1795, %v66_v44  }
 0x282   :  { %v219_v45 = vpop.permute.xlu0 %218  ;;  %v341_v47 = vpop.permute.xlu1 %340 }
 0x283   :  { %v225_v46 = vsel %vm220_vm2, %v219_v45, 0  ;;  %v346_v48 = vsel %vm220_vm2, %v341_v47, 0 }
 0x284   :  { %1667 = vmatpush3.bf16.xpose.msra.mxu1 %v225_v46 }
 0x285   :  { %1678 = vmatprep.subr.bf16.mxu1 %v1889_v14 }
 0x286   :  { %v339_v49 = vpop.permute.xlu1 %338 }
 0x28b   :  { %1669 = vmatmul.mubr.msk.bf16.vlgmr.msra.gmra.mxu1 %vm220_vm2, %v2045_v41 }
 0x28c   :  { %1679 = vmatpush3.bf16.xpose.msra.mxu1 %v346_v48  ;;  %1680 = vmatprep.mubr.msk.bf16.mxu1 %vm1890_vm1, %v1889_v14 }
 0x28d   :  { %1690 = vmatprep.subr.bf16.mxu1 %v1889_v14 }
 0x28f   :  { %v76_v53 = vpop.permute.xlu0 %75 }
 0x290   :  { %vm93_vm4 = vcmp.eq.f32.partialorder %v76_v53, %v1521_v50 }
 0x291   :  { %v95_v56 = vsel %vm93_vm4, %v1522_v52, 0.0 }
 0x292   :  { %v1524_v58 = vadd.f32 -1.0, %v95_v56 }
 0x293   :  { %1681 = vmatmul.mubr.msk.bf16.vlgmr.msra.gmra.mxu1 %vm220_vm2, %v339_v49  ;;  %v71_v51 = vpop.permute.xlu1 %70 }
 0x294   :  { %1694 = vmatprep.mubr.msk.bf16.mxu1 %vm1890_vm1, %v1889_v14  ;;  %vm92_vm3 = vcmp.eq.f32.partialorder %v71_v51, %v1521_v50  ;;  %v2078_v60 = vmul.f32 10000.0, %v1524_v58  ;;  %v1809_v51 = vld [vmem:[%s2339_s8 + $0x8] sm:$0xff]  }
 0x295   :  { %v94_v54 = vsel %vm92_vm3, %v1522_v52, 0.0  ;;  %1691 = vmatpush3.bf16.msra.mxu1 %v1809_v51  ;;  %v1541_v51 = vld [vmem:[%s2345_s13] ss:$0 sm:$0xff] }
 0x296   :  { %v1523_v55 = vadd.f32 -1.0, %v94_v54  ;;  %1692 = vmatprep.subr.bf16.mxu1 %v1889_v14  ;;  %v1810_v54 = vld [vmem:[%s2339_s8] sm:$0xff]  }
 0x298   :  { %v2076_v57 = vmul.f32 10000.0, %v1523_v55 }
 0x299   :  { %1693 = vmatpush3.bf16.msra.mxu1 %v1810_v54 }
 0x29a   :  { %1706 = vmatprep.subr.bf16.mxu1 %v1889_v14 }
 0x34b   :  { %v261_v59 = vpop.f32.mrf.mxu1 }
 0x34c   :  { %v262_v61 = vadd.f32 %v261_v59, %v2076_v57 }
 0x34d   :  { %v1670_v62 = vpop.f32.mrf.mxu1 }
 0x34e   :  { %v268_v63 = vsel %vm220_vm2, %v262_v61, -inf }
 0x34f   :  { %269 = vmax.xlane.f32.xlu1 %v268_v63  ;;  %v264_v0 = vpop.f32.mrf.mxu1 }
 0x350   :  { %v265_v1 = vadd.f32 %v264_v0, %v2078_v60 }
 0x351   :  { %v1671_v2 = vpop.f32.mrf.mxu1 }
 0x352   :  { %v271_v3 = vsel %vm220_vm2, %v265_v1, -inf }
 0x353   :  { %v382_v4 = vpop.f32.mrf.mxu1  ;;  %272 = vmax.xlane.f32.xlu0 %v271_v3 }
 0x354   :  { %v383_v5 = vadd.f32 %v382_v4, %v2076_v57 }
 0x355   :  { %v1682_v6 = vpop.f32.mrf.mxu1 }
 0x356   :  { %v389_v7 = vsel %vm220_vm2, %v383_v5, -inf  ;;  %v1535_v6 = vld [vmem:[%s2340_s9] ss:$0 sm:$0xff] }
 0x357   :  { %v385_v8 = vpop.f32.mrf.mxu1  ;;  %390 = vmax.xlane.f32.xlu0 %v389_v7 }
 0x358   :  { %v386_v9 = vadd.f32 %v385_v8, %v2078_v60 }
 0x359   :  { %v1683_v10 = vpop.f32.mrf.mxu1 }
 0x35a   :  { %v392_v11 = vsel %vm220_vm2, %v386_v9, -inf }
 0x35b   :  { %393 = vmax.xlane.f32.xlu1 %v392_v11 }
 0x3d8   :  { %v270_v12 = vpop.xlane.xlu1 %269 }
 0x3d9   :  { %v274_v13 = vsub.f32 %v262_v61, %v270_v12 }
 0x3db   :  { %v276_v15 = vmul.f32 1.442695, %v274_v13 }
 0x3dc   :  { %v273_v16 = vpop.xlane.xlu0 %272 }
 0x3dd   :  { %1833 = vpow2.f32 %v276_v15  ;;  %v275_v17 = vsub.f32 %v265_v1, %v273_v16 }
 0x3df   :  { %v278_v18 = vmul.f32 1.442695, %v275_v17 }
 0x3e0   :  { %v391_v19 = vpop.xlane.xlu0 %390 }
 0x3e1   :  { %1835 = vpow2.f32 %v278_v18  ;;  %v395_v20 = vsub.f32 %v383_v5, %v391_v19 }
 0x3e3   :  { %v397_v21 = vmul.f32 1.442695, %v395_v20 }
 0x3e4   :  { %v394_v22 = vpop.xlane.xlu1 %393 }
 0x3e5   :  { %1837 = vpow2.f32 %v397_v21  ;;  %v396_v23 = vsub.f32 %v386_v9, %v394_v22 }
 0x3e7   :  { %v399_v24 = vmul.f32 1.442695, %v396_v23 }
 0x3e9   :  { %1839 = vpow2.f32 %v399_v24 }
 0x3ea   :  { %v1834_v25 = vpop.eup %1833 }
 0x3eb   :  { %v280_v26 = vsel %vm220_vm2, %v1834_v25, 0.0 }
 0x3ec   :  { %281 = vadd.xlane.f32.xlu0 %v280_v26 }
 0x3ee   :  { %v1836_v27 = vpop.eup %1835 }
 0x3ef   :  { %v283_v28 = vsel %vm220_vm2, %v1836_v27, 0.0 }
 0x3f0   :  { %284 = vadd.xlane.f32.xlu1 %v283_v28 }
 0x3f2   :  { %v1838_v29 = vpop.eup %1837 }
 0x3f3   :  { %v401_v30 = vsel %vm220_vm2, %v1838_v29, 0.0 }
 0x3f4   :  { %402 = vadd.xlane.f32.xlu0 %v401_v30 }
 0x3f6   :  { %v1840_v33 = vpop.eup %1839 }
 0x3f7   :  { %v404_v34 = vsel %vm220_vm2, %v1840_v33, 0.0 }
 0x3f8   :  { %405 = vadd.xlane.f32.xlu1 %v404_v34 }
 0x409   :  { %412 = vrot.lane.b32.xlu1 %v2045_v41, %s1895_s1 }
 0x40a   :  { %291 = vrot.lane.b32.xlu0 %v2045_v41, %s1896_s3 }
 0x475   :  { %v282_v35 = vpop.xlane.xlu0 %281 }
 0x476   :  { %1841 = vrcp.f32 %v282_v35 }
 0x479   :  { %v285_v36 = vpop.xlane.xlu1 %284 }
 0x47a   :  { %1843 = vrcp.f32 %v285_v36 }
 0x47d   :  { %v403_v37 = vpop.xlane.xlu0 %402 }
 0x47e   :  { %1845 = vrcp.f32 %v403_v37 }
 0x481   :  { %v406_v38 = vpop.xlane.xlu1 %405  ;;  %v292_v39 = vpop.permute.xlu0 %291 }
 0x482   :  { %1847 = vrcp.f32 %v406_v38  ;;  %1673 = vmatpush3.bf16.msra.mxu0 %v292_v39  ;;  %v1539_v38 = vld [vmem:[%s2342_s10] ss:$0 sm:$0xff] }
 0x483   :  { %1684 = vmatprep.subr.bf16.mxu0 %v1889_v14  ;;  %v1842_v40 = vpop.eup %1841 }
 0x484   :  { %v288_v43 = vmul.f32 %v1842_v40, %v1834_v25 }
 0x485   :  { %v413_v46 = vpop.permute.xlu1 %412 }
 0x487   :  { %v1844_v42 = vpop.eup %1843 }
 0x488   :  { %v289_v44 = vmul.f32 %v1844_v42, %v1836_v27  ;;  %v1812_v27 = vld [vmem:[%s2341_s12] sm:$0xff]  }
 0x48a   :  { %v290_v45 = vpack.c.bf16 %v289_v44, %v288_v43  ;;  %v1540_v43 = vld [vmem:[%s2343_s11] ss:$0 sm:$0xff] }
 0x48b   :  { %v1846_v41 = vpop.eup %1845 }
 0x48c   :  { %1675 = vmatmul.mubr.msk.bf16.vlgmr.msra.gmra.mxu0 %vm220_vm2, %v290_v45  ;;  %v409_v48 = vmul.f32 %v1846_v41, %v1838_v29 }
 0x48d   :  { %1685 = vmatpush3.bf16.msra.mxu0 %v413_v46  ;;  %1686 = vmatprep.mubr.msk.bf16.mxu0 %vm1890_vm1, %v1889_v14 }
 0x48e   :  { %1698 = vmatprep.subr.bf16.mxu0 %v1889_v14 }
 0x48f   :  { %v1848_v47 = vpop.eup %1847 }
 0x490   :  { %v410_v49 = vmul.f32 %v1848_v47, %v1840_v33  ;;  %v1813_v47 = vld [vmem:[%s2344_s14 + $0x18] sm:$0xff]  }
 0x492   :  { %v411_v50 = vpack.c.bf16 %v410_v49, %v409_v48  ;;  %v1814_v48 = vld [vmem:[%s2344_s14 + $0x10] sm:$0xff]   ;;  %v1815_v49 = vld [vmem:[%s2344_s14 + $0x8] sm:$0xff]  }
 0x494   :  { %1687 = vmatmul.mubr.msk.bf16.vlgmr.msra.gmra.mxu0 %vm220_vm2, %v411_v50  ;;  %v1816_v50 = vld [vmem:[%s2344_s14] sm:$0xff]  }
 0x495   :  { %1702 = vmatprep.mubr.msk.bf16.mxu0 %vm1890_vm1, %v1889_v14 }
 0x54c   :  { %v331_v52 = vpop.f32.mrf.mxu0 }
 0x54e   :  { %v1676_v53 = vpop.f32.mrf.mxu0 }
 0x550   :  { %v334_v55 = vpop.f32.mrf.mxu0 }
 0x552   :  { %v1677_v56 = vpop.f32.mrf.mxu0 }
 0x554   :  { %v452_v58 = vpop.f32.mrf.mxu0 }
 0x556   :  { %v1688_v59 = vpop.f32.mrf.mxu0 }
 0x558   :  { %v455_v61 = vpop.f32.mrf.mxu0 }
 0x559   :  { %v1797_v62 = vpack.i.bf16 %v455_v61, %v452_v58 }
 0x55a   :  { %v1689_v63 = vpop.f32.mrf.mxu0 }
 0x55b   :  { %1798 = vrot.lane.b32.xlu1 %v1797_v62, %s1897_s28 }
 0x5cd   :  { %v1799_v0 = vpop.permute.xlu1 %1798 }
 0x5ce   :  { %v1801_v1 = vunpack.i.h.bf16 %v1799_v0  ;;  %v1800_v2 = vunpack.i.l.bf16 %v1799_v0 }
 0x5d0   :  { %v468_v3 = vsel %vm220_vm2, %v334_v55, %v1801_v1  ;;  %v467_v4 = vsel %vm220_vm2, %v331_v52, %v1800_v2 }
 0x5d1   :  { %v469_v5 = vpack.c.bf16 %v468_v3, %v467_v4 }
 0x5d3   :  { %1695 = vmatmul.mubr.msk.bf16.vlgmr.msra.gmra.mxu1 %vm104_vm0, %v469_v5 }
 0x5d4   :  { %1714 = vmatprep.mubr.msk.bf16.mxu1 %vm1890_vm1, %v1889_v14  ;;  %1707 = vmatpush3.bf16.msra.mxu1 %v1813_v47 }
 0x5d5   :  { %1708 = vmatprep.subr.bf16.mxu1 %v1889_v14 }
 0x5d8   :  { %1709 = vmatpush3.bf16.msra.mxu1 %v1814_v48 }
 0x5d9   :  { %1710 = vmatprep.subr.bf16.mxu1 %v1889_v14 }
 0x5dc   :  { %1711 = vmatpush3.bf16.msra.mxu1 %v1815_v49  ;;  %v1558_v49 = vld [vmem:[%s2364_s24 + $0x1] ss:$0 sm:$0xff] }
 0x5dd   :  { %1712 = vmatprep.subr.bf16.mxu1 %v1889_v14 }
 0x5e0   :  { %1713 = vmatpush3.bf16.msra.mxu1 %v1816_v50 }
 0x5e1   :  { %1732 = vmatprep.subr.bf16.mxu1 %v1889_v14 }
 0x693   :  { %v530_v7 = vpop.f32.mrf.mxu1 }
 0x694   :  { %v531_v8 = vadd.f32 %v1535_v6, %v530_v7  ;;  %v1545_v7 = vld [vmem:[%s2346_s15] ss:$0 sm:$0xff] }
 0x695   :  { %v1696_v9 = vpop.f32.mrf.mxu1 }
 0x696   :  { %v537_v10 = vadd.f32 %v531_v8, %v2033_v31 }
 0x697   :  { %v533_v11 = vpop.f32.mrf.mxu1 }
 0x698   :  { %v534_v12 = vadd.f32 %v1535_v6, %v533_v11  ;;  %v541_v13 = vsel %vm104_vm0, %v537_v10, 0.0 }
 0x699   :  { %542 = vadd.xlane.f32.xlu1 %v541_v13  ;;  %v1697_v15 = vpop.f32.mrf.mxu1 }
 0x69a   :  { %v538_v16 = vadd.f32 %v534_v12, %v2035_v32  ;;  %v1811_v32 = vld [vmem:[%s2341_s12 + $0x8] sm:$0xff]  }
 0x69b   :  { %1699 = vmatpush3.bf16.msra.mxu0 %v1811_v32 }
 0x69c   :  { %v544_v17 = vsel %vm104_vm0, %v538_v16, 0.0  ;;  %1700 = vmatprep.subr.bf16.mxu0 %v1889_v14 }
 0x69d   :  { %545 = vadd.xlane.f32.xlu0 %v544_v17 }
 0x69f   :  { %1701 = vmatpush3.bf16.msra.mxu0 %v1812_v27  ;;  %v1817_v27 = vld [vmem:[%s2361_s26 + $0x18] sm:$0xff]  }
 0x6a0   :  { %1718 = vmatprep.subr.bf16.mxu0 %v1889_v14 }
 0x722   :  { %v543_v18 = vpop.xlane.xlu1 %542 }
 0x723   :  { %v547_v19 = vmul.f32 0.03125, %v543_v18 }
 0x725   :  { %v549_v20 = vsub.f32 %v537_v10, %v547_v19 }
 0x726   :  { %v546_v21 = vpop.xlane.xlu0 %545 }
 0x727   :  { %v548_v22 = vmul.f32 0.03125, %v546_v21  ;;  %v551_v23 = vmul.f32 %v549_v20, %v549_v20 }
 0x729   :  { %v550_v24 = vsub.f32 %v538_v16, %v548_v22  ;;  %v553_v31 = vsel %vm104_vm0, %v551_v23, 0.0 }
 0x72a   :  { %554 = vadd.xlane.f32.xlu0 %v553_v31 }
 0x72b   :  { %v552_v25 = vmul.f32 %v550_v24, %v550_v24 }
 0x72d   :  { %v556_v26 = vsel %vm104_vm0, %v552_v25, 0.0 }
 0x72e   :  { %557 = vadd.xlane.f32.xlu0 %v556_v26 }
 0x7b3   :  { %v555_v28 = vpop.xlane.xlu0 %554 }
 0x7b4   :  { %v559_v29 = vmul.f32 0.03125, %v555_v28  ;;  %v1818_v28 = vld [vmem:[%s2361_s26 + $0x10] sm:$0xff]  }
 0x7b6   :  { %v561_v30 = vadd.f32 1e-12, %v559_v29 }
 0x7b7   :  { %v558_v33 = vpop.xlane.xlu0 %557 }
 0x7b8   :  { %1849 = vrsqrt.f32 %v561_v30  ;;  %v560_v34 = vmul.f32 0.03125, %v558_v33 }
 0x7ba   :  { %v562_v35 = vadd.f32 1e-12, %v560_v34 }
 0x7bc   :  { %1851 = vrsqrt.f32 %v562_v35 }
 0x7c5   :  { %v1850_v36 = vpop.eup %1849 }
 0x7c6   :  { %v565_v37 = vmul.f32 %v1850_v36, %v549_v20 }
 0x7c8   :  { %v573_v42 = vmul.f32 %v1539_v38, %v565_v37 }
 0x7c9   :  { %v1852_v39 = vpop.eup %1851 }
 0x7ca   :  { %v566_v40 = vmul.f32 %v1852_v39, %v550_v24  ;;  %v581_v45 = vadd.f32 %v1540_v43, %v573_v42  ;;  %v1551_v39 = vld [vmem:[%s2347_s16] ss:$0 sm:$0xff] }
 0x7cc   :  { %v574_v44 = vmul.f32 %v1539_v38, %v566_v40 }
 0x7ce   :  { %v582_v46 = vadd.f32 %v1540_v43, %v574_v44  ;;  %v1552_v44 = vld [vmem:[%s2348_s17] ss:$0 sm:$0xff] }
 0x7d0   :  { %v583_v41 = vpack.c.bf16 %v582_v46, %v581_v45 }
 0x7d2   :  { %1703 = vmatmul.mubr.msk.bf16.vlgmr.msra.gmra.mxu0 %vm104_vm0, %v583_v41 }
 0x7d3   :  { %1722 = vmatprep.mubr.msk.bf16.mxu0 %vm1890_vm1, %v1889_v14  ;;  %1719 = vmatpush3.bf16.msra.mxu0 %v1817_v27 }
 0x7d4   :  { %1720 = vmatprep.subr.bf16.mxu0 %v1889_v14 }
 0x7d7   :  { %1721 = vmatpush3.bf16.msra.mxu0 %v1818_v28 }
 0x7d8   :  { %1726 = vmatprep.subr.bf16.mxu0 %v1889_v14 }
 0x892   :  { %v644_v52 = vpop.f32.mrf.mxu0 }
 0x893   :  { %v645_v53 = vadd.f32 %v1541_v51, %v644_v52 }
 0x894   :  { %v1704_v54 = vpop.f32.mrf.mxu0 }
 0x895   :  { %v654_v55 = vmul.f32 0.70710677, %v645_v53  ;;  %v651_v1 = vmul.f32 0.5, %v645_v53 }
 0x896   :  { %v647_v56 = vpop.f32.mrf.mxu0 }
 0x897   :  { %1853 = verf.f32 %v654_v55  ;;  %v648_v58 = vadd.f32 %v1541_v51, %v647_v56 }
 0x898   :  { %v1705_v59 = vpop.f32.mrf.mxu0 }
 0x899   :  { %v655_v61 = vmul.f32 0.70710677, %v648_v58  ;;  %v652_v2 = vmul.f32 0.5, %v648_v58 }
 0x89b   :  { %1855 = verf.f32 %v655_v61 }
 0x8a4   :  { %v1854_v62 = vpop.eup %1853 }
 0x8a5   :  { %v658_v63 = vadd.f32 1.0, %v1854_v62 }
 0x8a7   :  { %v660_v4 = vmul.f32 %v658_v63, %v651_v1 }
 0x8a8   :  { %v1856_v0 = vpop.eup %1855 }
 0x8a9   :  { %v659_v3 = vadd.f32 1.0, %v1856_v0 }
 0x8ab   :  { %v661_v5 = vmul.f32 %v659_v3, %v652_v2 }
 0x8ad   :  { %v662_v6 = vpack.c.bf16 %v661_v5, %v660_v4 }
 0x8af   :  { %1715 = vmatmul.mubr.msk.bf16.vlgmr.msra.gmra.mxu1 %vm702_vm5, %v662_v6 }
 0x8b0   :  { %1734 = vmatprep.mubr.msk.bf16.mxu1 %vm1890_vm1, %v1889_v14 }
 0x96f   :  { %v740_v8 = vpop.f32.mrf.mxu1 }
 0x970   :  { %v741_v9 = vadd.f32 %v1545_v7, %v740_v8 }
 0x971   :  { %v1716_v10 = vpop.f32.mrf.mxu1 }
 0x972   :  { %v747_v11 = vadd.f32 %v741_v9, %v581_v45 }
 0x973   :  { %v743_v12 = vpop.f32.mrf.mxu1 }
 0x974   :  { %v744_v13 = vadd.f32 %v1545_v7, %v743_v12  ;;  %v751_v15 = vsel %vm104_vm0, %v747_v11, 0.0 }
 0x975   :  { %752 = vadd.xlane.f32.xlu1 %v751_v15  ;;  %v1717_v16 = vpop.f32.mrf.mxu1 }
 0x976   :  { %v748_v17 = vadd.f32 %v744_v13, %v582_v46 }
 0x978   :  { %v754_v18 = vsel %vm104_vm0, %v748_v17, 0.0 }
 0x979   :  { %755 = vadd.xlane.f32.xlu0 %v754_v18 }
 0x9fe   :  { %v753_v19 = vpop.xlane.xlu1 %752 }
 0x9ff   :  { %v757_v20 = vmul.f32 0.03125, %v753_v19 }
 0xa01   :  { %v759_v21 = vsub.f32 %v747_v11, %v757_v20 }
 0xa02   :  { %v756_v22 = vpop.xlane.xlu0 %755 }
 0xa03   :  { %v758_v23 = vmul.f32 0.03125, %v756_v22  ;;  %v761_v24 = vmul.f32 %v759_v21, %v759_v21 }
 0xa05   :  { %v760_v31 = vsub.f32 %v748_v17, %v758_v23  ;;  %v763_v25 = vsel %vm104_vm0, %v761_v24, 0.0 }
 0xa06   :  { %764 = vadd.xlane.f32.xlu1 %v763_v25 }
 0xa07   :  { %v762_v26 = vmul.f32 %v760_v31, %v760_v31 }
 0xa09   :  { %v766_v32 = vsel %vm104_vm0, %v762_v26, 0.0 }
 0xa0a   :  { %767 = vadd.xlane.f32.xlu0 %v766_v32 }
 0xa8f   :  { %v765_v29 = vpop.xlane.xlu1 %764 }
 0xa90   :  { %v769_v30 = vmul.f32 0.03125, %v765_v29 }
 0xa92   :  { %v771_v33 = vadd.f32 1e-12, %v769_v30 }
 0xa93   :  { %v768_v34 = vpop.xlane.xlu0 %767 }
 0xa94   :  { %1857 = vrsqrt.f32 %v771_v33  ;;  %v770_v35 = vmul.f32 0.03125, %v768_v34 }
 0xa96   :  { %v772_v36 = vadd.f32 1e-12, %v770_v35 }
 0xa98   :  { %1859 = vrsqrt.f32 %v772_v36 }
 0xaa1   :  { %v1858_v37 = vpop.eup %1857 }
 0xaa2   :  { %v775_v38 = vmul.f32 %v1858_v37, %v759_v21 }
 0xaa4   :  { %v783_v43 = vmul.f32 %v1551_v39, %v775_v38 }
 0xaa5   :  { %v1860_v40 = vpop.eup %1859 }
 0xaa6   :  { %v776_v42 = vmul.f32 %v1860_v40, %v760_v31  ;;  %v2187_v46 = vadd.f32 %v1552_v44, %v783_v43 }
 0xaa8   :  { %v784_v45 = vmul.f32 %v1551_v39, %v776_v42 }
 0xaaa   :  { %v2189_v41 = vadd.f32 %v1552_v44, %v784_v45 }
 0xaac   :  { %v793_v47 = vpack.c.bf16 %v2189_v41, %v2187_v46 }
 0xaae   :  { %1723 = vmatmul.mubr.msk.bf16.vlgmr.msra.gmra.mxu0 %vm104_vm0, %v793_v47 }
 0xaaf   :  { %1728 = vmatprep.mubr.msk.bf16.mxu0 %vm1890_vm1, %v1889_v14 }
 0xb6e   :  { %v856_v48 = vpop.f32.mrf.mxu0 }
 0xb6f   :  { %v857_v52 = vadd.f32 %v1558_v49, %v856_v48 }
 0xb70   :  { %v1724_v50 = vpop.f32.mrf.mxu0 }
 0xb72   :  { %v859_v51 = vpop.f32.mrf.mxu0 }
 0xb73   :  { %v860_v53 = vadd.f32 %v1558_v49, %v859_v51 }
 0xb74   :  { %v1725_v54 = vpop.f32.mrf.mxu0 }
 0xb75   :  { %v2199_v55 = vpack.c.bf16 %v860_v53, %v857_v52  ;;  %v1819_v52 = vld [vmem:[%s2339_s8 + $0x18] sm:$0xff]  }
 0xb77   :  { %986 = vrot.lane.b32.xlu0 %v2199_v55, %s1891_s4  ;;  %865 = vrot.lane.b32.xlu1 %v2199_v55, %s1892_s25 }
 0xb7b   :  { %984 = vrot.lane.b32.xlu1 %v2199_v55, %s1893_s5 }
 0xbe9   :  { %v866_v56 = vpop.permute.xlu1 %865  ;;  %v987_v59 = vpop.permute.xlu0 %986 }
 0xbea   :  { %v871_v58 = vsel %vm220_vm2, %v866_v56, 0  ;;  %v992_v61 = vsel %vm220_vm2, %v987_v59, 0 }
 0xbeb   :  { %1727 = vmatpush3.bf16.xpose.msra.mxu0 %v871_v58 }
 0xbec   :  { %1738 = vmatprep.subr.bf16.mxu0 %v1889_v14 }
 0xbed   :  { %v985_v62 = vpop.permute.xlu1 %984 }
 0xbf2   :  { %1729 = vmatmul.mubr.msk.bf16.vlgmr.msra.gmra.mxu0 %vm220_vm2, %v2199_v55 }
 0xbf3   :  { %1739 = vmatpush3.bf16.xpose.msra.mxu0 %v992_v61  ;;  %1740 = vmatprep.mubr.msk.bf16.mxu0 %vm1890_vm1, %v1889_v14 }
 0xbf4   :  { %1750 = vmatprep.subr.bf16.mxu0 %v1889_v14 }
 0xbfa   :  { %1741 = vmatmul.mubr.msk.bf16.vlgmr.msra.gmra.mxu0 %vm220_vm2, %v985_v62 }
 0xbfb   :  { %1754 = vmatprep.mubr.msk.bf16.mxu0 %vm1890_vm1, %v1889_v14  ;;  %1751 = vmatpush3.bf16.msra.mxu0 %v1819_v52 }
 0xbfc   :  { %1752 = vmatprep.subr.bf16.mxu0 %v1889_v14 }
 0xcb2   :  { %v907_v63 = vpop.f32.mrf.mxu0 }
 0xcb3   :  { %v908_v0 = vadd.f32 %v907_v63, %v2076_v57 }
 0xcb4   :  { %v1730_v1 = vpop.f32.mrf.mxu0 }
 0xcb5   :  { %v914_v2 = vsel %vm220_vm2, %v908_v0, -inf }
 0xcb6   :  { %915 = vmax.xlane.f32.xlu1 %v914_v2  ;;  %v910_v3 = vpop.f32.mrf.mxu0 }
 0xcb7   :  { %v911_v4 = vadd.f32 %v910_v3, %v2078_v60 }
 0xcb8   :  { %v1731_v5 = vpop.f32.mrf.mxu0 }
 0xcb9   :  { %v917_v6 = vsel %vm220_vm2, %v911_v4, -inf }
 0xcba   :  { %918 = vmax.xlane.f32.xlu0 %v917_v6  ;;  %v1028_v7 = vpop.f32.mrf.mxu0 }
 0xcbb   :  { %v1029_v8 = vadd.f32 %v1028_v7, %v2076_v57  ;;  %v1571_v7 = vld [vmem:[%s2340_s9 + $0x1] ss:$0 sm:$0xff] }
 0xcbc   :  { %v1742_v9 = vpop.f32.mrf.mxu0 }
 0xcbd   :  { %v1035_v10 = vsel %vm220_vm2, %v1029_v8, -inf }
 0xcbe   :  { %1036 = vmax.xlane.f32.xlu0 %v1035_v10  ;;  %v1031_v11 = vpop.f32.mrf.mxu0 }
 0xcbf   :  { %v1032_v12 = vadd.f32 %v1031_v11, %v2078_v60 }
 0xcc0   :  { %v1743_v13 = vpop.f32.mrf.mxu0 }
 0xcc1   :  { %v1038_v15 = vsel %vm220_vm2, %v1032_v12, -inf }
 0xcc2   :  { %1039 = vmax.xlane.f32.xlu1 %v1038_v15 }
 0xd3f   :  { %v916_v16 = vpop.xlane.xlu1 %915 }
 0xd40   :  { %v920_v17 = vsub.f32 %v908_v0, %v916_v16 }
 0xd42   :  { %v922_v18 = vmul.f32 1.442695, %v920_v17 }
 0xd43   :  { %v919_v19 = vpop.xlane.xlu0 %918 }
 0xd44   :  { %1861 = vpow2.f32 %v922_v18  ;;  %v921_v20 = vsub.f32 %v911_v4, %v919_v19 }
 0xd46   :  { %v924_v21 = vmul.f32 1.442695, %v921_v20 }
 0xd47   :  { %v1037_v22 = vpop.xlane.xlu0 %1036 }
 0xd48   :  { %1863 = vpow2.f32 %v924_v21  ;;  %v1041_v57 = vsub.f32 %v1029_v8, %v1037_v22 }
 0xd4a   :  { %v1043_v23 = vmul.f32 1.442695, %v1041_v57 }
 0xd4b   :  { %v1040_v24 = vpop.xlane.xlu1 %1039 }
 0xd4c   :  { %1865 = vpow2.f32 %v1043_v23  ;;  %v1042_v31 = vsub.f32 %v1032_v12, %v1040_v24 }
 0xd4e   :  { %v1045_v25 = vmul.f32 1.442695, %v1042_v31 }
 0xd50   :  { %1867 = vpow2.f32 %v1045_v25 }
 0xd51   :  { %v1862_v60 = vpop.eup %1861 }
 0xd52   :  { %v926_v26 = vsel %vm220_vm2, %v1862_v60, 0.0 }
 0xd53   :  { %927 = vadd.xlane.f32.xlu0 %v926_v26 }
 0xd55   :  { %v1864_v32 = vpop.eup %1863 }
 0xd56   :  { %v929_v27 = vsel %vm220_vm2, %v1864_v32, 0.0 }
 0xd57   :  { %930 = vadd.xlane.f32.xlu1 %v929_v27 }
 0xd59   :  { %v1866_v28 = vpop.eup %1865 }
 0xd5a   :  { %v1047_v29 = vsel %vm220_vm2, %v1866_v28, 0.0 }
 0xd5b   :  { %1048 = vadd.xlane.f32.xlu0 %v1047_v29 }
 0xd5d   :  { %v1868_v30 = vpop.eup %1867 }
 0xd5e   :  { %v1050_v33 = vsel %vm220_vm2, %v1868_v30, 0.0 }
 0xd5f   :  { %1051 = vadd.xlane.f32.xlu1 %v1050_v33 }
 0xd70   :  { %1058 = vrot.lane.b32.xlu1 %v2199_v55, %s1895_s1 }
 0xd71   :  { %937 = vrot.lane.b32.xlu0 %v2199_v55, %s1896_s3  ;;  %v1820_v55 = vld [vmem:[%s2339_s8 + $0x10] sm:$0xff]  }
 0xd72   :  { %1753 = vmatpush3.bf16.msra.mxu0 %v1820_v55 }
 0xd73   :  { %1766 = vmatprep.subr.bf16.mxu0 %v1889_v14 }
 0xddc   :  { %v928_v34 = vpop.xlane.xlu0 %927 }
 0xddd   :  { %1869 = vrcp.f32 %v928_v34 }
 0xde0   :  { %v931_v35 = vpop.xlane.xlu1 %930 }
 0xde1   :  { %1871 = vrcp.f32 %v931_v35  ;;  %v1577_v35 = vld [vmem:[%s2342_s10 + $0x1] ss:$0 sm:$0xff] }
 0xde4   :  { %v1049_v36 = vpop.xlane.xlu0 %1048 }
 0xde5   :  { %1873 = vrcp.f32 %v1049_v36 }
 0xde8   :  { %v938_v37 = vpop.permute.xlu0 %937  ;;  %v1052_v38 = vpop.xlane.xlu1 %1051 }
 0xde9   :  { %1875 = vrcp.f32 %v1052_v38  ;;  %1733 = vmatpush3.bf16.msra.mxu1 %v938_v37 }
 0xdea   :  { %1744 = vmatprep.subr.bf16.mxu1 %v1889_v14  ;;  %v1870_v39 = vpop.eup %1869 }
 0xdeb   :  { %v934_v42 = vmul.f32 %v1870_v39, %v1862_v60  ;;  %v1822_v60 = vld [vmem:[%s2341_s12 + $0x10] sm:$0xff]   ;;  %v1578_v39 = vld [vmem:[%s2343_s11 + $0x1] ss:$0 sm:$0xff] }
 0xdec   :  { %v1059_v45 = vpop.permute.xlu1 %1058 }
 0xdee   :  { %v1872_v40 = vpop.eup %1871 }
 0xdef   :  { %v935_v43 = vmul.f32 %v1872_v40, %v1864_v32 }
 0xdf1   :  { %v936_v44 = vpack.c.bf16 %v935_v43, %v934_v42 }
 0xdf2   :  { %v1874_v47 = vpop.eup %1873 }
 0xdf3   :  { %1735 = vmatmul.mubr.msk.bf16.vlgmr.msra.gmra.mxu1 %vm220_vm2, %v936_v44  ;;  %v1055_v49 = vmul.f32 %v1874_v47, %v1866_v28  ;;  %v1824_v47 = vld [vmem:[%s2344_s14 + $0x30] sm:$0xff]  }
 0xdf4   :  { %1745 = vmatpush3.bf16.msra.mxu1 %v1059_v45  ;;  %1746 = vmatprep.mubr.msk.bf16.mxu1 %vm1890_vm1, %v1889_v14  ;;  %v1823_v45 = vld [vmem:[%s2344_s14 + $0x38] sm:$0xff]  }
 0xdf5   :  { %1758 = vmatprep.subr.bf16.mxu1 %v1889_v14 }
 0xdf6   :  { %v1876_v48 = vpop.eup %1875 }
 0xdf7   :  { %v1056_v50 = vmul.f32 %v1876_v48, %v1868_v30  ;;  %v1825_v48 = vld [vmem:[%s2344_s14 + $0x28] sm:$0xff]  }
 0xdf9   :  { %v1057_v51 = vpack.c.bf16 %v1056_v50, %v1055_v49  ;;  %v1826_v49 = vld [vmem:[%s2344_s14 + $0x20] sm:$0xff]  }
 0xdfa   :  { %v1584_v50 = vld [vmem:[%s2345_s13 + $0x1] ss:$0 sm:$0xff] }
 0xdfb   :  { %1747 = vmatmul.mubr.msk.bf16.vlgmr.msra.gmra.mxu1 %vm220_vm2, %v1057_v51 }
 0xdfc   :  { %1762 = vmatprep.mubr.msk.bf16.mxu1 %vm1890_vm1, %v1889_v14 }
 0xeb3   :  { %v977_v53 = vpop.f32.mrf.mxu1 }
 0xeb5   :  { %v1736_v54 = vpop.f32.mrf.mxu1 }
 0xeb7   :  { %v980_v56 = vpop.f32.mrf.mxu1 }
 0xeb9   :  { %v1737_v58 = vpop.f32.mrf.mxu1 }
 0xebb   :  { %v1098_v59 = vpop.f32.mrf.mxu1 }
 0xebd   :  { %v1748_v61 = vpop.f32.mrf.mxu1 }
 0xebf   :  { %v1101_v62 = vpop.f32.mrf.mxu1 }
 0xec0   :  { %v1802_v63 = vpack.i.bf16 %v1101_v62, %v1098_v59 }
 0xec1   :  { %v1749_v0 = vpop.f32.mrf.mxu1 }
 0xec2   :  { %1803 = vrot.lane.b32.xlu1 %v1802_v63, %s1897_s28 }
 0xf34   :  { %v1804_v1 = vpop.permute.xlu1 %1803 }
 0xf35   :  { %v1806_v2 = vunpack.i.h.bf16 %v1804_v1  ;;  %v1805_v3 = vunpack.i.l.bf16 %v1804_v1 }
 0xf37   :  { %v1114_v4 = vsel %vm220_vm2, %v980_v56, %v1806_v2  ;;  %v1113_v5 = vsel %vm220_vm2, %v977_v53, %v1805_v3 }
 0xf38   :  { %v1115_v6 = vpack.c.bf16 %v1114_v4, %v1113_v5 }
 0xf3a   :  { %1755 = vmatmul.mubr.msk.bf16.vlgmr.msra.gmra.mxu0 %vm104_vm0, %v1115_v6  ;;  %v1597_v6 = vld [vmem:[%s2346_s15 + $0x1] ss:$0 sm:$0xff] }
 0xf3b   :  { %1774 = vmatprep.mubr.msk.bf16.mxu0 %vm1890_vm1, %v1889_v14  ;;  %1767 = vmatpush3.bf16.msra.mxu0 %v1823_v45 }
 0xf3c   :  { %1768 = vmatprep.subr.bf16.mxu0 %v1889_v14 }
 0xf3f   :  { %1769 = vmatpush3.bf16.msra.mxu0 %v1824_v47 }
 0xf40   :  { %1770 = vmatprep.subr.bf16.mxu0 %v1889_v14 }
 0xf43   :  { %1771 = vmatpush3.bf16.msra.mxu0 %v1825_v48 }
 0xf44   :  { %1772 = vmatprep.subr.bf16.mxu0 %v1889_v14 }
 0xf47   :  { %1773 = vmatpush3.bf16.msra.mxu0 %v1826_v49 }
 0xffa   :  { %v1178_v8 = vpop.f32.mrf.mxu0 }
 0xffb   :  { %v1179_v9 = vadd.f32 %v1571_v7, %v1178_v8 }
 0xffc   :  { %v1756_v10 = vpop.f32.mrf.mxu0 }
 0xffd   :  { %v1185_v11 = vadd.f32 %v1179_v9, %v2187_v46 }
 0xffe   :  { %v1181_v12 = vpop.f32.mrf.mxu0 }
 0xfff   :  { %v1182_v13 = vadd.f32 %v1571_v7, %v1181_v12  ;;  %v1191_v15 = vsel %vm104_vm0, %v1185_v11, 0.0 }
0x1000   :  { %1192 = vadd.xlane.f32.xlu1 %v1191_v15  ;;  %v1757_v16 = vpop.f32.mrf.mxu0 }
0x1001   :  { %v1186_v17 = vadd.f32 %v1182_v13, %v2189_v41  ;;  %v1821_v41 = vld [vmem:[%s2341_s12 + $0x18] sm:$0xff]  }
0x1002   :  { %1759 = vmatpush3.bf16.msra.mxu1 %v1821_v41  ;;  %v1828_v41 = vld [vmem:[%s2349_s18] sm:$0xff]  }
0x1003   :  { %v1194_v18 = vsel %vm104_vm0, %v1186_v17, 0.0  ;;  %1760 = vmatprep.subr.bf16.mxu1 %v1889_v14 }
0x1004   :  { %1195 = vadd.xlane.f32.xlu0 %v1194_v18 }
0x1006   :  { %1761 = vmatpush3.bf16.msra.mxu1 %v1822_v60 }
0x1007   :  { %1778 = vmatprep.subr.bf16.mxu1 %v1889_v14 }
0x1089   :  { %v1193_v19 = vpop.xlane.xlu1 %1192 }
0x108a   :  { %v1197_v20 = vmul.f32 0.03125, %v1193_v19 }
0x108c   :  { %v1199_v21 = vsub.f32 %v1185_v11, %v1197_v20 }
0x108d   :  { %v1196_v22 = vpop.xlane.xlu0 %1195 }
0x108e   :  { %v1198_v57 = vmul.f32 0.03125, %v1196_v22  ;;  %v1201_v23 = vmul.f32 %v1199_v21, %v1199_v21 }
0x1090   :  { %v1200_v24 = vsub.f32 %v1186_v17, %v1198_v57  ;;  %v1203_v46 = vsel %vm104_vm0, %v1201_v23, 0.0 }
0x1091   :  { %1204 = vadd.xlane.f32.xlu0 %v1203_v46 }
0x1092   :  { %v1202_v31 = vmul.f32 %v1200_v24, %v1200_v24 }
0x1094   :  { %v1206_v25 = vsel %vm104_vm0, %v1202_v31, 0.0 }
0x1095   :  { %1207 = vadd.xlane.f32.xlu0 %v1206_v25  ;;  %v1827_v25 = vld [vmem:[%s2349_s18 + $0x8] sm:$0xff]  }
0x111a   :  { %v1205_v26 = vpop.xlane.xlu0 %1204 }
0x111b   :  { %v1209_v32 = vmul.f32 0.03125, %v1205_v26 }
0x111d   :  { %v1211_v27 = vadd.f32 1e-12, %v1209_v32 }
0x111e   :  { %v1208_v28 = vpop.xlane.xlu0 %1207 }
0x111f   :  { %1877 = vrsqrt.f32 %v1211_v27  ;;  %v1210_v29 = vmul.f32 0.03125, %v1208_v28 }
0x1121   :  { %v1212_v30 = vadd.f32 1e-12, %v1210_v29 }
0x1123   :  { %1879 = vrsqrt.f32 %v1212_v30 }
0x112c   :  { %v1878_v33 = vpop.eup %1877 }
0x112d   :  { %v1215_v34 = vmul.f32 %v1878_v33, %v1199_v21 }
0x112f   :  { %v1223_v38 = vmul.f32 %v1577_v35, %v1215_v34  ;;  %v1605_v34 = vld [vmem:[%s2347_s16 + $0x1] ss:$0 sm:$0xff] }
0x1130   :  { %v1880_v36 = vpop.eup %1879 }
0x1131   :  { %v1216_v37 = vmul.f32 %v1880_v36, %v1200_v24  ;;  %v1231_v42 = vadd.f32 %v1578_v39, %v1223_v38 }
0x1133   :  { %v1224_v40 = vmul.f32 %v1577_v35, %v1216_v37 }
0x1135   :  { %v1232_v43 = vadd.f32 %v1578_v39, %v1224_v40 }
0x1137   :  { %v1233_v44 = vpack.c.bf16 %v1232_v43, %v1231_v42 }
0x1139   :  { %1763 = vmatmul.mubr.msk.bf16.vlgmr.msra.gmra.mxu1 %vm104_vm0, %v1233_v44 }
0x113a   :  { %1782 = vmatprep.mubr.msk.bf16.mxu1 %vm1890_vm1, %v1889_v14  ;;  %1779 = vmatpush3.bf16.msra.mxu1 %v1827_v25 }
0x113b   :  { %1780 = vmatprep.subr.bf16.mxu1 %v1889_v14  ;;  %v1606_v14 = vld [vmem:[%s2348_s17 + $0x1] ss:$0 sm:$0xff] }
0x113e   :  { %1781 = vmatpush3.bf16.msra.mxu1 %v1828_v41 }
0x11f9   :  { %v1296_v51 = vpop.f32.mrf.mxu1 }
0x11fa   :  { %v1297_v52 = vadd.f32 %v1584_v50, %v1296_v51 }
0x11fb   :  { %v1764_v53 = vpop.f32.mrf.mxu1 }
0x11fc   :  { %v1305_v54 = vmul.f32 0.70710677, %v1297_v52  ;;  %v1303_v0 = vmul.f32 0.5, %v1297_v52 }
0x11fd   :  { %v1299_v55 = vpop.f32.mrf.mxu1 }
0x11fe   :  { %1881 = verf.f32 %v1305_v54  ;;  %v1300_v56 = vadd.f32 %v1584_v50, %v1299_v55 }
0x11ff   :  { %v1765_v58 = vpop.f32.mrf.mxu1 }
0x1200   :  { %v1306_v59 = vmul.f32 0.70710677, %v1300_v56  ;;  %v1304_v1 = vmul.f32 0.5, %v1300_v56 }
0x1202   :  { %1883 = verf.f32 %v1306_v59 }
0x120b   :  { %v1882_v61 = vpop.eup %1881 }
0x120c   :  { %v1309_v62 = vadd.f32 1.0, %v1882_v61 }
0x120e   :  { %v1311_v3 = vmul.f32 %v1309_v62, %v1303_v0 }
0x120f   :  { %v1884_v63 = vpop.eup %1883 }
0x1210   :  { %v1310_v2 = vadd.f32 1.0, %v1884_v63 }
0x1212   :  { %v1312_v4 = vmul.f32 %v1310_v2, %v1304_v1 }
0x1214   :  { %v1313_v5 = vpack.c.bf16 %v1312_v4, %v1311_v3 }
0x1216   :  { %1775 = vmatmul.mubr.msk.bf16.vlgmr.msra.gmra.mxu0 %vm702_vm5, %v1313_v5 }
0x12d6   :  { %v1392_v7 = vpop.f32.mrf.mxu0 }
0x12d7   :  { %v1393_v8 = vadd.f32 %v1597_v6, %v1392_v7 }
0x12d8   :  { %v1776_v9 = vpop.f32.mrf.mxu0 }
0x12d9   :  { %v1399_v10 = vadd.f32 %v1393_v8, %v1231_v42 }
0x12da   :  { %v1395_v11 = vpop.f32.mrf.mxu0 }
0x12db   :  { %v1396_v12 = vadd.f32 %v1597_v6, %v1395_v11  ;;  %v1405_v13 = vsel %vm104_vm0, %v1399_v10, 0.0 }
0x12dc   :  { %1406 = vadd.xlane.f32.xlu1 %v1405_v13  ;;  %v1777_v15 = vpop.f32.mrf.mxu0 }
0x12dd   :  { %v1400_v16 = vadd.f32 %v1396_v12, %v1232_v43  ;;  %v1607_v43 = vld [vmem:[%s2350_s19] ss:$0 sm:$0xff] }
0x12df   :  { %v1408_v17 = vsel %vm104_vm0, %v1400_v16, 0.0 }
0x12e0   :  { %1409 = vadd.xlane.f32.xlu0 %v1408_v17 }
0x1365   :  { %v1407_v18 = vpop.xlane.xlu1 %1406 }
0x1366   :  { %v1411_v19 = vmul.f32 0.03125, %v1407_v18 }
0x1368   :  { %v1413_v20 = vsub.f32 %v1399_v10, %v1411_v19 }
0x1369   :  { %v1410_v21 = vpop.xlane.xlu0 %1409 }
0x136a   :  { %v1412_v22 = vmul.f32 0.03125, %v1410_v21  ;;  %v1415_v57 = vmul.f32 %v1413_v20, %v1413_v20 }
0x136c   :  { %v1414_v23 = vsub.f32 %v1400_v16, %v1412_v22  ;;  %v1417_v24 = vsel %vm104_vm0, %v1415_v57, 0.0 }
0x136d   :  { %1418 = vadd.xlane.f32.xlu1 %v1417_v24 }
0x136e   :  { %v1416_v46 = vmul.f32 %v1414_v23, %v1414_v23 }
0x1370   :  { %v1420_v31 = vsel %vm104_vm0, %v1416_v46, 0.0 }
0x1371   :  { %1421 = vadd.xlane.f32.xlu0 %v1420_v31 }
0x13f6   :  { %v1419_v60 = vpop.xlane.xlu1 %1418 }
0x13f7   :  { %v1423_v26 = vmul.f32 0.03125, %v1419_v60 }
0x13f9   :  { %v1425_v32 = vadd.f32 1e-12, %v1423_v26 }
0x13fa   :  { %v1422_v27 = vpop.xlane.xlu0 %1421 }
0x13fb   :  { %1885 = vrsqrt.f32 %v1425_v32  ;;  %v1424_v28 = vmul.f32 0.03125, %v1422_v27 }
0x13fd   :  { %v1426_v29 = vadd.f32 1e-12, %v1424_v28 }
0x13ff   :  { %1887 = vrsqrt.f32 %v1426_v29 }
0x1408   :  { %v1886_v30 = vpop.eup %1885 }
0x1409   :  { %v1429_v33 = vmul.f32 %v1886_v30, %v1413_v20 }
0x140b   :  { %v1437_v37 = vmul.f32 %v1605_v34, %v1429_v33 }
0x140c   :  { %v1888_v35 = vpop.eup %1887 }
0x140d   :  { %v1430_v36 = vmul.f32 %v1888_v35, %v1414_v23  ;;  %v1445_v39 = vadd.f32 %v1606_v14, %v1437_v37 }
0x140f   :  { %v1438_v38 = vmul.f32 %v1605_v34, %v1430_v36 }
0x1411   :  { %v1446_v40 = vadd.f32 %v1606_v14, %v1438_v38 }
0x1413   :  { %v1447_v42 = vpack.c.bf16 %v1446_v40, %v1445_v39 }
0x1415   :  { %1783 = vmatmul.mubr.msk.bf16.vlgmr.msra.gmra.mxu1 %vm104_vm0, %v1447_v42 }
0x14d5   :  { %v1508_v44 = vpop.f32.mrf.mxu1 }
0x14d6   :  { %v1509_v45 = vadd.f32 %v1607_v43, %v1508_v44 }
0x14d7   :  { %v1784_v47 = vpop.f32.mrf.mxu1 }
0x14d8   :  { %1515 = vst [vmem:[%s2351_s20] sm:$0xff] %v1509_v45 }
0x14d9   :  { %v1511_v48 = vpop.f32.mrf.mxu1 }
0x14da   :  { %v1512_v49 = vadd.f32 %v1607_v43, %v1511_v48 }
0x14db   :  { %v1785_v50 = vpop.f32.mrf.mxu1 }
0x14dc   :  { %1516 = vst [vmem:[%s2351_s20 + $0x8] sm:$0xff] %v1512_v49 }

</bundles_post_ra>
